<compile_context>
chip_gen: v5e
topology: v5e:2x2
jax: 0.10.0
libtpu: 0.0.40
codegen_flags: <defaults>
</compile_context>

<pallas_src>
import functools

import numpy as np
import jax
import jax.numpy as jnp
from jax.experimental import pallas as pl
from jax.experimental.pallas import tpu as pltpu


# ---------------------------------------------------------------------------
# Packed-parameter layout (rows of the single `theta` operand, width 40).
# All block starts are multiples of 8 so in-kernel slices are sublane-aligned.
# ---------------------------------------------------------------------------
_W1_R0, _W1_ROWS = 0, 48        # conv1 im2col weights, K=48, N=40 (4 branches x 10)
_W2_R0, _W2_ROWS = 48, 90       # conv2 im2col weights, K=90,  N=16
_W3_R0, _W3_ROWS = 144, 144     # conv3 im2col weights, K=144, N=32
_WH_R0, _WH_ROWS = 288, 32      # merged 1x1 heads,     K=32,  N=8 (2 cls|4 reg|2 pad)
_VEC_R0 = 320                   # 7 vector rows: b1t, a1t, b2, a2, b3, a3, bhead
_THETA_ROWS, _THETA_COLS = 328, 40


# ---------------------------------------------------------------------------
# Fused kernel: whole batch in one invocation (batch folded into flat rows).
# ---------------------------------------------------------------------------
def _pnet_kernel(x_ref, th_ref, out_ref, pool_ref, y2_ref, *, pitch, qp, q2, q3):
    p = pitch

    # --- packed parameters: one operand, sliced at aligned static offsets ---
    w1 = th_ref[_W1_R0:_W1_R0 + _W1_ROWS, 0:40]
    w2 = th_ref[_W2_R0:_W2_R0 + _W2_ROWS, 0:16]
    w3 = th_ref[_W3_R0:_W3_R0 + _W3_ROWS, 0:32]
    whd = th_ref[_WH_R0:_WH_R0 + _WH_ROWS, 0:8]
    b1 = th_ref[_VEC_R0 + 0:_VEC_R0 + 1, 0:40]
    a1 = th_ref[_VEC_R0 + 1:_VEC_R0 + 2, 0:40]
    b2 = th_ref[_VEC_R0 + 2:_VEC_R0 + 3, 0:16]
    a2 = th_ref[_VEC_R0 + 3:_VEC_R0 + 4, 0:16]
    b3 = th_ref[_VEC_R0 + 4:_VEC_R0 + 5, 0:32]
    a3 = th_ref[_VEC_R0 + 5:_VEC_R0 + 6, 0:32]
    bh = th_ref[_VEC_R0 + 6:_VEC_R0 + 7, 0:8]

    # --- conv1 (3x3, 3->10) + PReLU + 2x2 ceil max-pool ------------------------
    # Input is 12-channel space-to-depth (4 row/col parity planes concatenated).
    # im2col over the 4 parity offsets gives K=48; the four 10-wide output
    # groups are the four pool branches, so pooling is 3 elementwise maxes.
    col1 = jnp.concatenate(
        [x_ref[pl.ds(o, qp), :] for o in (0, 1, p, p + 1)], axis=-1)       # (qp, 48)
    z = jnp.dot(col1, w1, preferred_element_type=jnp.float32) + b1         # (qp, 40)
    z = jnp.where(z > 0.0, z, z * a1)                                      # PReLU
    pool_ref[...] = jnp.maximum(jnp.maximum(z[:, 0:10], z[:, 10:20]),
                                jnp.maximum(z[:, 20:30], z[:, 30:40]))

    # --- conv2 (3x3, 10->16) + PReLU: single K=90 dot --------------------------
    col2 = jnp.concatenate(
        [pool_ref[pl.ds(dh * p + dw, q2), :]
         for dh in range(3) for dw in range(3)], axis=-1)                  # (q2, 90)
    y2 = jnp.dot(col2, w2, preferred_element_type=jnp.float32) + b2
    y2_ref[...] = jnp.where(y2 > 0.0, y2, y2 * a2)

    # --- conv3 (3x3, 16->32) + PReLU: single K=144 dot -------------------------
    col3 = jnp.concatenate(
        [y2_ref[pl.ds(dh * p + dw, q3), :]
         for dh in range(3) for dw in range(3)], axis=-1)                  # (q3, 144)
    feat = jnp.dot(col3, w3, preferred_element_type=jnp.float32) + b3
    feat = jnp.where(feat > 0.0, feat, feat * a3)                          # (q3, 32)

    # --- both 1x1 heads: one dot, one lane-dense (q3, 8) store -----------------
    head = jnp.dot(feat, whd, preferred_element_type=jnp.float32) + bh     # (q3, 8)
    logits = head[:, 0:2]
    m = jnp.max(logits, axis=-1, keepdims=True)
    e = jnp.exp(logits - m)
    s = jnp.sum(e, axis=-1, keepdims=True)
    r = pl.reciprocal(s, approx=True)
    r = r * (2.0 - s * r)               # one Newton step: f32 accuracy, still no divide
    out_ref[...] = jnp.concatenate([e * r, head[:, 2:8]], axis=-1)


# ---------------------------------------------------------------------------
# Parameter packing: all weights/biases/PReLU slopes into one (328, 40) array.
# ---------------------------------------------------------------------------
def _pack_params(params):
    f32 = jnp.float32

    def taps(wt):  # torch OIHW -> (KH*KW*Cin, Cout), tap-major rows
        o, i, kh, kw = wt.shape
        return jnp.transpose(wt, (2, 3, 1, 0)).reshape(kh * kw * i, o).astype(f32)

    # conv1 fused with the 2x2 pool:
    #   lhs lanes  = 12*j + 3*(2*pr+ps) + cin   (j = parity offset (u,v), plane (pr,ps))
    #   out lanes  = 10*(2*r+s) + cout          (pool branch (r,s))
    w1 = params["conv1_w"].astype(f32)                       # (10, 3, 3, 3)
    w1big = jnp.zeros((_W1_ROWS, 40), f32)
    for u in (0, 1):
        for v in (0, 1):
            j = 2 * u + v
            for r in (0, 1):
                for s in (0, 1):
                    q = 2 * r + s
                    for pr in (0, 1):
                        for ps in (0, 1):
                            dh, dw = 2 * u + pr - r, 2 * v + ps - s
                            if 0 <= dh < 3 and 0 <= dw < 3:
                                blk = jnp.transpose(w1[:, :, dh, dw], (1, 0))   # (3, 10)
                                row = 12 * j + 3 * (2 * pr + ps)
                                w1big = w1big.at[row:row + 3, 10 * q:10 * q + 10].set(blk)

    w2col = taps(params["conv2_w"])                          # (90, 16)
    w3col = taps(params["conv3_w"])                          # (144, 32)
    wh1 = jnp.transpose(params["conv4_1_w"][:, :, 0, 0], (1, 0)).astype(f32)   # (32, 2)
    wh2 = jnp.transpose(params["conv4_2_w"][:, :, 0, 0], (1, 0)).astype(f32)   # (32, 4)
    whead = jnp.zeros((_WH_ROWS, 8), f32).at[:, 0:2].set(wh1).at[:, 2:6].set(wh2)
    bhead = (jnp.zeros((8,), f32)
             .at[0:2].set(params["conv4_1_b"].astype(f32))
             .at[2:6].set(params["conv4_2_b"].astype(f32)))

    theta = jnp.zeros((_THETA_ROWS, _THETA_COLS), f32)
    theta = theta.at[_W1_R0:_W1_R0 + _W1_ROWS, 0:40].set(w1big)
    theta = theta.at[_W2_R0:_W2_R0 + _W2_ROWS, 0:16].set(w2col)
    theta = theta.at[_W3_R0:_W3_R0 + _W3_ROWS, 0:32].set(w3col)
    theta = theta.at[_WH_R0:_WH_R0 + _WH_ROWS, 0:8].set(whead)
    theta = theta.at[_VEC_R0 + 0, 0:40].set(jnp.tile(params["conv1_b"].astype(f32), 4))
    theta = theta.at[_VEC_R0 + 1, 0:40].set(jnp.tile(params["prelu1"].astype(f32), 4))
    theta = theta.at[_VEC_R0 + 2, 0:16].set(params["conv2_b"].astype(f32))
    theta = theta.at[_VEC_R0 + 3, 0:16].set(params["prelu2"].astype(f32))
    theta = theta.at[_VEC_R0 + 4, 0:32].set(params["conv3_b"].astype(f32))
    theta = theta.at[_VEC_R0 + 5, 0:32].set(params["prelu3"].astype(f32))
    theta = theta.at[_VEC_R0 + 6, 0:8].set(bhead)
    return theta


# ---------------------------------------------------------------------------
# Full PNet forward (PyTorch semantics: input NCHW, returns (b, a))
# ---------------------------------------------------------------------------
def pnet_forward(params, x_nchw):
    n, cin, h, w = x_nchw.shape
    assert cin == 3
    # TODO(synk): odd H/W (ceil-mode pool edge) and row-band tiling (parallel
    # band grid axis for v7x, bf16 storage) not handled; even H/W only.
    assert h % 2 == 0 and w % 2 == 0 and h >= 12 and w >= 12

    r8 = lambda v: -(-v // 8) * 8
    hh, wh = h // 2, w // 2
    p = r8(wh)                      # row pitch, padded to a sublane multiple of 8
    s_img = hh * p                  # per-image slab stride in flat rows (mult of 8)

    ho1, wo1 = h - 2, w - 2
    hpo, wpo = ho1 // 2, wo1 // 2   # even ho1/wo1 -> no ceil-mode edge
    ho2, wo2 = hpo - 2, wpo - 2
    ho3, wo3 = ho2 - 2, wo2 - 2
    assert ho3 >= 1 and wo3 >= 1
    # Pitch/batch-isolation invariant: a valid output pixel (y, x<wo_k) only
    # reads previous-layer rows (y+dh)*p + (x+dw), which are valid because
    # wo_{k-1} <= p and every valid read stays below hh*p rows from its image
    # base; garbage pitch columns / cross-image rows only feed garbage rows,
    # which are cropped in the wrapper.
    assert wpo <= p and wo2 <= p and wo3 <= p

    q3i = ho3 * p                                   # per-image head rows
    q3 = (n - 1) * s_img + q3i                      # global rows per layer
    q2 = r8(q3 + 2 * p + 2)
    qp = r8(q2 + 2 * p + 2)
    qx = r8(max(qp + p + 1, n * s_img))

    # glue: NCHW -> NHWC, space-to-depth into 12 channels (byte-neutral), flat
    # rows with pitch p, batch folded into the flat-row dimension.
    # TODO(synk): fold this split into the kernel via strided-row DMAs / bf16.
    x = jnp.transpose(x_nchw, (0, 2, 3, 1)).astype(jnp.float32)
    x12 = jnp.concatenate(
        [x[:, pr::2, ps::2, :] for pr in (0, 1) for ps in (0, 1)], axis=-1)
    if p > wh:
        x12 = jnp.pad(x12, ((0, 0), (0, 0), (0, p - wh), (0, 0)))
    x12 = x12.reshape(n * s_img, 12)
    x12 = jnp.pad(x12, ((0, qx - n * s_img), (0, 0)))

    theta = _pack_params(params)

    kernel = functools.partial(_pnet_kernel, pitch=p, qp=qp, q2=q2, q3=q3)

    # explicit VMEM budget (128-lane-padded f32 buffers, IO double-buffered)
    est = 4 * 128 * (2 * qx + 2 * _THETA_ROWS + 2 * q3 + qp + q2)
    vmem_limit = int(min(64 * 1024 * 1024, max(4 * 1024 * 1024, 2 * est)))

    out = pl.pallas_call(
        kernel,
        out_shape=jax.ShapeDtypeStruct((q3, 8), jnp.float32),
        grid=(1,),
        in_specs=[pl.BlockSpec((qx, 12), lambda i: (0, 0)),
                  pl.BlockSpec((_THETA_ROWS, _THETA_COLS), lambda i: (0, 0))],
        out_specs=pl.BlockSpec((q3, 8), lambda i: (0, 0)),
        scratch_shapes=[pltpu.VMEM((qp, 10), jnp.float32),
                        pltpu.VMEM((q2, 16), jnp.float32)],
        compiler_params=pltpu.CompilerParams(
            dimension_semantics=("arbitrary",),
            vmem_limit_bytes=vmem_limit),
    )(x12, theta)

    # glue: crop pitch/batch padding, split the merged head, back to NCHW.
    blocks = jnp.stack([out[b * s_img:b * s_img + q3i] for b in range(n)])
    blocks = blocks.reshape(n, ho3, p, 8)[:, :, :wo3, :]
    a = jnp.transpose(blocks[..., 0:2], (0, 3, 1, 2))        # class softmax
    b_reg = jnp.transpose(blocks[..., 2:6], (0, 3, 1, 2))    # box regression
    return b_reg, a


# ---------------------------------------------------------------------------
# Deterministic parameter init (torch-style fan-in uniform; PReLU slope 0.25)
# ---------------------------------------------------------------------------
def init_params(key):
    def conv_init(k, cout, cin, kh, kw):
        kw_, kb_ = jax.random.split(k)
        bound = 1.0 / np.sqrt(cin * kh * kw)
        wt = jax.random.uniform(kw_, (cout, cin, kh, kw), jnp.float32, -bound, bound)
        b = jax.random.uniform(kb_, (cout,), jnp.float32, -bound, bound)
        return wt, b

    ks = jax.random.split(key, 5)
    prm = {}
    prm["conv1_w"], prm["conv1_b"] = conv_init(ks[0], 10, 3, 3, 3)
    prm["prelu1"] = jnp.full((10,), 0.25, jnp.float32)
    prm["conv2_w"], prm["conv2_b"] = conv_init(ks[1], 16, 10, 3, 3)
    prm["prelu2"] = jnp.full((16,), 0.25, jnp.float32)
    prm["conv3_w"], prm["conv3_b"] = conv_init(ks[2], 32, 16, 3, 3)
    prm["prelu3"] = jnp.full((32,), 0.25, jnp.float32)
    prm["conv4_1_w"], prm["conv4_1_b"] = conv_init(ks[3], 2, 32, 1, 1)
    prm["conv4_2_w"], prm["conv4_2_b"] = conv_init(ks[4], 4, 32, 1, 1)
    return prm


# ---------------------------------------------------------------------------
# Pure-JAX reference (mirrors the PyTorch forward exactly) for correctness
# ---------------------------------------------------------------------------
def ref_forward(params, x):
    def conv(x, wt, b):
        y = jax.lax.conv_general_dilated(
            x, wt, (1, 1), "VALID", dimension_numbers=("NCHW", "OIHW", "NCHW"))
        return y + b[None, :, None, None]

    def prelu(x, a):
        return jnp.where(x > 0, x, x * a[None, :, None, None])

    x = prelu(conv(x, params["conv1_w"], params["conv1_b"]), params["prelu1"])
    _, _, h, w = x.shape
    x = jax.lax.reduce_window(
        x, -jnp.inf, jax.lax.max, (1, 1, 2, 2), (1, 1, 2, 2),
        ((0, 0), (0, 0), (0, (-h) % 2), (0, (-w) % 2)))      # ceil_mode padding
    x = prelu(conv(x, params["conv2_w"], params["conv2_b"]), params["prelu2"])
    x = prelu(conv(x, params["conv3_w"], params["conv3_b"]), params["prelu3"])
    a = jax.nn.softmax(conv(x, params["conv4_1_w"], params["conv4_1_b"]), axis=1)
    b = conv(x, params["conv4_2_w"], params["conv4_2_b"])
    return b, a


if __name__ == "__main__":
    key = jax.random.PRNGKey(0)
    kx, kp = jax.random.split(key)
    x = jax.random.normal(kx, (2, 3, 16, 16), jnp.float32)    # NCHW, like PyTorch
    params = init_params(kp)

    fwd = jax.jit(pnet_forward)
    b_out, a_out = fwd(params, x)
    jax.block_until_ready((b_out, a_out))

    assert b_out.shape == (2, 4, 3, 3) and a_out.shape == (2, 2, 3, 3)
    b_ref, a_ref = ref_forward(params, x)
    np.testing.assert_allclose(np.asarray(b_out), np.asarray(b_ref), rtol=1e-3, atol=1e-3)
    np.testing.assert_allclose(np.asarray(a_out), np.asarray(a_ref), rtol=1e-3, atol=1e-3)

    print("KERNEL_OK")
</pallas_src>

<mosaic_0001>
module attributes {stable_mosaic.version = 11 : i64} {
  func.func @_pnet_kernel(%arg0: i32, %arg1: memref<152x12xf32, #tpu.memory_space<vmem>>, %arg2: memref<328x40xf32, #tpu.memory_space<vmem>>, %arg3: memref<88x8xf32, #tpu.memory_space<vmem>>, %arg4: memref<136x10xf32, #tpu.memory_space<vmem>>, %arg5: memref<112x16xf32, #tpu.memory_space<vmem>>) attributes {dimension_semantics = [#tpu.dimension_semantics<arbitrary>], iteration_bounds = array<i64: 1>, scalar_prefetch = 0 : i64, scratch_operands = 2 : i64, tpu.core_type = #tpu.core_type<tc>, window_params = [{pipeline_mode = #tpu.pipeline_mode<synchronous>, transform_indices = @transform_0, window_bounds = array<i64: 152, 12>}, {pipeline_mode = #tpu.pipeline_mode<synchronous>, transform_indices = @transform_1, window_bounds = array<i64: 328, 40>}, {pipeline_mode = #tpu.pipeline_mode<synchronous>, transform_indices = @transform_2, window_bounds = array<i64: 88, 8>}]} {
    %c0 = arith.constant 0 : index
    %c0_0 = arith.constant 0 : index
    %0 = vector.load %arg2[%c0, %c0_0] : memref<328x40xf32, #tpu.memory_space<vmem>>, vector<48x40xf32>
    %c48 = arith.constant 48 : index
    %c0_1 = arith.constant 0 : index
    %1 = vector.load %arg2[%c48, %c0_1] : memref<328x40xf32, #tpu.memory_space<vmem>>, vector<90x16xf32>
    %c144 = arith.constant 144 : index
    %c0_2 = arith.constant 0 : index
    %2 = vector.load %arg2[%c144, %c0_2] : memref<328x40xf32, #tpu.memory_space<vmem>>, vector<144x32xf32>
    %c288 = arith.constant 288 : index
    %c0_3 = arith.constant 0 : index
    %3 = vector.load %arg2[%c288, %c0_3] : memref<328x40xf32, #tpu.memory_space<vmem>>, vector<32x8xf32>
    %c320 = arith.constant 320 : index
    %c0_4 = arith.constant 0 : index
    %4 = vector.load %arg2[%c320, %c0_4] : memref<328x40xf32, #tpu.memory_space<vmem>>, vector<1x40xf32>
    %c321 = arith.constant 321 : index
    %c0_5 = arith.constant 0 : index
    %5 = vector.load %arg2[%c321, %c0_5] : memref<328x40xf32, #tpu.memory_space<vmem>>, vector<1x40xf32>
    %c322 = arith.constant 322 : index
    %c0_6 = arith.constant 0 : index
    %6 = vector.load %arg2[%c322, %c0_6] : memref<328x40xf32, #tpu.memory_space<vmem>>, vector<1x16xf32>
    %c323 = arith.constant 323 : index
    %c0_7 = arith.constant 0 : index
    %7 = vector.load %arg2[%c323, %c0_7] : memref<328x40xf32, #tpu.memory_space<vmem>>, vector<1x16xf32>
    %c324 = arith.constant 324 : index
    %c0_8 = arith.constant 0 : index
    %8 = vector.load %arg2[%c324, %c0_8] : memref<328x40xf32, #tpu.memory_space<vmem>>, vector<1x32xf32>
    %c325 = arith.constant 325 : index
    %c0_9 = arith.constant 0 : index
    %9 = vector.load %arg2[%c325, %c0_9] : memref<328x40xf32, #tpu.memory_space<vmem>>, vector<1x32xf32>
    %c326 = arith.constant 326 : index
    %c0_10 = arith.constant 0 : index
    %10 = vector.load %arg2[%c326, %c0_10] : memref<328x40xf32, #tpu.memory_space<vmem>>, vector<1x8xf32>
    %c0_11 = arith.constant 0 : index
    %c0_12 = arith.constant 0 : index
    %11 = vector.load %arg1[%c0_11, %c0_12] : memref<152x12xf32, #tpu.memory_space<vmem>>, vector<136x12xf32>
    %c1 = arith.constant 1 : index
    %c0_13 = arith.constant 0 : index
    %12 = vector.load %arg1[%c1, %c0_13] : memref<152x12xf32, #tpu.memory_space<vmem>>, vector<136x12xf32>
    %c8 = arith.constant 8 : index
    %c0_14 = arith.constant 0 : index
    %13 = vector.load %arg1[%c8, %c0_14] : memref<152x12xf32, #tpu.memory_space<vmem>>, vector<136x12xf32>
    %c9 = arith.constant 9 : index
    %c0_15 = arith.constant 0 : index
    %14 = vector.load %arg1[%c9, %c0_15] : memref<152x12xf32, #tpu.memory_space<vmem>>, vector<136x12xf32>
    %15 = tpu.concatenate %11, %12, %13, %14 in 1 : vector<136x12xf32>, vector<136x12xf32>, vector<136x12xf32>, vector<136x12xf32> -> vector<136x48xf32>
    %cst = arith.constant dense<0.000000e+00> : vector<136x40xf32>
    %16 = tpu.matmul %15, %0, %cst {dimension_numbers = #tpu.dot_dimension_numbers<[1], [0], [0], [1], [0, 0, 1, 1], [], []>} : vector<136x48xf32>, vector<48x40xf32>, vector<136x40xf32> -> vector<136x40xf32>
    %17 = vector.broadcast %4 : vector<1x40xf32> to vector<136x40xf32>
    %18 = arith.addf %16, %17 : vector<136x40xf32>
    %cst_16 = arith.constant 0.000000e+00 : f32
    %19 = vector.broadcast %cst_16 : f32 to vector<136x40xf32>
    %20 = arith.cmpf ogt, %18, %19 : vector<136x40xf32>
    %21 = vector.broadcast %5 : vector<1x40xf32> to vector<136x40xf32>
    %22 = arith.mulf %18, %21 : vector<136x40xf32>
    %23 = arith.select %20, %18, %22 : vector<136x40xi1>, vector<136x40xf32>
    %24 = vector.extract_strided_slice %23 {offsets = [0, 0], sizes = [136, 10], strides = [1, 1]} : vector<136x40xf32> to vector<136x10xf32>
    %25 = vector.extract_strided_slice %23 {offsets = [0, 10], sizes = [136, 10], strides = [1, 1]} : vector<136x40xf32> to vector<136x10xf32>
    %26 = arith.maximumf %24, %25 : vector<136x10xf32>
    %27 = vector.extract_strided_slice %23 {offsets = [0, 20], sizes = [136, 10], strides = [1, 1]} : vector<136x40xf32> to vector<136x10xf32>
    %28 = vector.extract_strided_slice %23 {offsets = [0, 30], sizes = [136, 10], strides = [1, 1]} : vector<136x40xf32> to vector<136x10xf32>
    %29 = arith.maximumf %27, %28 : vector<136x10xf32>
    %30 = arith.maximumf %26, %29 : vector<136x10xf32>
    %c0_17 = arith.constant 0 : index
    %c0_18 = arith.constant 0 : index
    %31 = vector.load %arg4[%c0_17, %c0_18] : memref<136x10xf32, #tpu.memory_space<vmem>>, vector<136x10xf32>
    tpu.vector_store %arg4[%c0_17, %c0_18], %30 {strides = array<i32>} : memref<136x10xf32, #tpu.memory_space<vmem>>, vector<136x10xf32>,
    %c0_19 = arith.constant 0 : index
    %c0_20 = arith.constant 0 : index
    %32 = vector.load %arg4[%c0_19, %c0_20] : memref<136x10xf32, #tpu.memory_space<vmem>>, vector<112x10xf32>
    %c1_21 = arith.constant 1 : index
    %c0_22 = arith.constant 0 : index
    %33 = vector.load %arg4[%c1_21, %c0_22] : memref<136x10xf32, #tpu.memory_space<vmem>>, vector<112x10xf32>
    %c2 = arith.constant 2 : index
    %c0_23 = arith.constant 0 : index
    %34 = vector.load %arg4[%c2, %c0_23] : memref<136x10xf32, #tpu.memory_space<vmem>>, vector<112x10xf32>
    %c8_24 = arith.constant 8 : index
    %c0_25 = arith.constant 0 : index
    %35 = vector.load %arg4[%c8_24, %c0_25] : memref<136x10xf32, #tpu.memory_space<vmem>>, vector<112x10xf32>
    %c9_26 = arith.constant 9 : index
    %c0_27 = arith.constant 0 : index
    %36 = vector.load %arg4[%c9_26, %c0_27] : memref<136x10xf32, #tpu.memory_space<vmem>>, vector<112x10xf32>
    %c10 = arith.constant 10 : index
    %c0_28 = arith.constant 0 : index
    %37 = vector.load %arg4[%c10, %c0_28] : memref<136x10xf32, #tpu.memory_space<vmem>>, vector<112x10xf32>
    %c16 = arith.constant 16 : index
    %c0_29 = arith.constant 0 : index
    %38 = vector.load %arg4[%c16, %c0_29] : memref<136x10xf32, #tpu.memory_space<vmem>>, vector<112x10xf32>
    %c17 = arith.constant 17 : index
    %c0_30 = arith.constant 0 : index
    %39 = vector.load %arg4[%c17, %c0_30] : memref<136x10xf32, #tpu.memory_space<vmem>>, vector<112x10xf32>
    %c18 = arith.constant 18 : index
    %c0_31 = arith.constant 0 : index
    %40 = vector.load %arg4[%c18, %c0_31] : memref<136x10xf32, #tpu.memory_space<vmem>>, vector<112x10xf32>
    %41 = tpu.concatenate %32, %33, %34, %35, %36, %37, %38, %39, %40 in 1 : vector<112x10xf32>, vector<112x10xf32>, vector<112x10xf32>, vector<112x10xf32>, vector<112x10xf32>, vector<112x10xf32>, vector<112x10xf32>, vector<112x10xf32>, vector<112x10xf32> -> vector<112x90xf32>
    %cst_32 = arith.constant dense<0.000000e+00> : vector<112x16xf32>
    %42 = tpu.matmul %41, %1, %cst_32 {dimension_numbers = #tpu.dot_dimension_numbers<[1], [0], [0], [1], [0, 0, 1, 1], [], []>} : vector<112x90xf32>, vector<90x16xf32>, vector<112x16xf32> -> vector<112x16xf32>
    %43 = vector.broadcast %6 : vector<1x16xf32> to vector<112x16xf32>
    %44 = arith.addf %42, %43 : vector<112x16xf32>
    %cst_33 = arith.constant 0.000000e+00 : f32
    %45 = vector.broadcast %cst_33 : f32 to vector<112x16xf32>
    %46 = arith.cmpf ogt, %44, %45 : vector<112x16xf32>
    %47 = vector.broadcast %7 : vector<1x16xf32> to vector<112x16xf32>
    %48 = arith.mulf %44, %47 : vector<112x16xf32>
    %49 = arith.select %46, %44, %48 : vector<112x16xi1>, vector<112x16xf32>
    %c0_34 = arith.constant 0 : index
    %c0_35 = arith.constant 0 : index
    %50 = vector.load %arg5[%c0_34, %c0_35] : memref<112x16xf32, #tpu.memory_space<vmem>>, vector<112x16xf32>
    tpu.vector_store %arg5[%c0_34, %c0_35], %49 {strides = array<i32>} : memref<112x16xf32, #tpu.memory_space<vmem>>, vector<112x16xf32>,
    %c0_36 = arith.constant 0 : index
    %c0_37 = arith.constant 0 : index
    %51 = vector.load %arg5[%c0_36, %c0_37] : memref<112x16xf32, #tpu.memory_space<vmem>>, vector<88x16xf32>
    %c1_38 = arith.constant 1 : index
    %c0_39 = arith.constant 0 : index
    %52 = vector.load %arg5[%c1_38, %c0_39] : memref<112x16xf32, #tpu.memory_space<vmem>>, vector<88x16xf32>
    %c2_40 = arith.constant 2 : index
    %c0_41 = arith.constant 0 : index
    %53 = vector.load %arg5[%c2_40, %c0_41] : memref<112x16xf32, #tpu.memory_space<vmem>>, vector<88x16xf32>
    %c8_42 = arith.constant 8 : index
    %c0_43 = arith.constant 0 : index
    %54 = vector.load %arg5[%c8_42, %c0_43] : memref<112x16xf32, #tpu.memory_space<vmem>>, vector<88x16xf32>
    %c9_44 = arith.constant 9 : index
    %c0_45 = arith.constant 0 : index
    %55 = vector.load %arg5[%c9_44, %c0_45] : memref<112x16xf32, #tpu.memory_space<vmem>>, vector<88x16xf32>
    %c10_46 = arith.constant 10 : index
    %c0_47 = arith.constant 0 : index
    %56 = vector.load %arg5[%c10_46, %c0_47] : memref<112x16xf32, #tpu.memory_space<vmem>>, vector<88x16xf32>
    %c16_48 = arith.constant 16 : index
    %c0_49 = arith.constant 0 : index
    %57 = vector.load %arg5[%c16_48, %c0_49] : memref<112x16xf32, #tpu.memory_space<vmem>>, vector<88x16xf32>
    %c17_50 = arith.constant 17 : index
    %c0_51 = arith.constant 0 : index
    %58 = vector.load %arg5[%c17_50, %c0_51] : memref<112x16xf32, #tpu.memory_space<vmem>>, vector<88x16xf32>
    %c18_52 = arith.constant 18 : index
    %c0_53 = arith.constant 0 : index
    %59 = vector.load %arg5[%c18_52, %c0_53] : memref<112x16xf32, #tpu.memory_space<vmem>>, vector<88x16xf32>
    %60 = tpu.concatenate %51, %52, %53, %54, %55, %56, %57, %58, %59 in 1 : vector<88x16xf32>, vector<88x16xf32>, vector<88x16xf32>, vector<88x16xf32>, vector<88x16xf32>, vector<88x16xf32>, vector<88x16xf32>, vector<88x16xf32>, vector<88x16xf32> -> vector<88x144xf32>
    %cst_54 = arith.constant dense<0.000000e+00> : vector<88x32xf32>
    %61 = tpu.matmul %60, %2, %cst_54 {dimension_numbers = #tpu.dot_dimension_numbers<[1], [0], [0], [1], [0, 0, 1, 1], [], []>} : vector<88x144xf32>, vector<144x32xf32>, vector<88x32xf32> -> vector<88x32xf32>
    %62 = vector.broadcast %8 : vector<1x32xf32> to vector<88x32xf32>
    %63 = arith.addf %61, %62 : vector<88x32xf32>
    %cst_55 = arith.constant 0.000000e+00 : f32
    %64 = vector.broadcast %cst_55 : f32 to vector<88x32xf32>
    %65 = arith.cmpf ogt, %63, %64 : vector<88x32xf32>
    %66 = vector.broadcast %9 : vector<1x32xf32> to vector<88x32xf32>
    %67 = arith.mulf %63, %66 : vector<88x32xf32>
    %68 = arith.select %65, %63, %67 : vector<88x32xi1>, vector<88x32xf32>
    %cst_56 = arith.constant dense<0.000000e+00> : vector<88x8xf32>
    %69 = tpu.matmul %68, %3, %cst_56 {dimension_numbers = #tpu.dot_dimension_numbers<[1], [0], [0], [1], [0, 0, 1, 1], [], []>} : vector<88x32xf32>, vector<32x8xf32>, vector<88x8xf32> -> vector<88x8xf32>
    %70 = vector.broadcast %10 : vector<1x8xf32> to vector<88x8xf32>
    %71 = arith.addf %69, %70 : vector<88x8xf32>
    %72 = vector.extract_strided_slice %71 {offsets = [0, 0], sizes = [88, 2], strides = [1, 1]} : vector<88x8xf32> to vector<88x2xf32>
    %cst_57 = arith.constant dense<0xFF800000> : vector<88xf32>
    %73 = vector.multi_reduction <maximumf>, %72, %cst_57 [1] : vector<88x2xf32> to vector<88xf32>
    %74 = vector.shape_cast %73 : vector<88xf32> to vector<88x1xf32>
    %75 = vector.broadcast %74 : vector<88x1xf32> to vector<88x2xf32>
    %76 = arith.subf %72, %75 : vector<88x2xf32>
    %77 = math.exp %76 : vector<88x2xf32>
    %cst_58 = arith.constant dense<0.000000e+00> : vector<88xf32>
    %78 = vector.multi_reduction <add>, %77, %cst_58 [1] : vector<88x2xf32> to vector<88xf32>
    %79 = vector.shape_cast %78 : vector<88xf32> to vector<88x1xf32>
    %80 = tpu.reciprocal %79 {approx = true} : vector<88x1xf32> -> vector<88x1xf32>
    %81 = arith.mulf %79, %80 : vector<88x1xf32>
    %cst_59 = arith.constant 2.000000e+00 : f32
    %82 = vector.broadcast %cst_59 : f32 to vector<88x1xf32>
    %83 = arith.subf %82, %81 : vector<88x1xf32>
    %84 = arith.mulf %80, %83 : vector<88x1xf32>
    %85 = vector.broadcast %84 : vector<88x1xf32> to vector<88x2xf32>
    %86 = arith.mulf %77, %85 : vector<88x2xf32>
    %87 = vector.extract_strided_slice %71 {offsets = [0, 2], sizes = [88, 6], strides = [1, 1]} : vector<88x8xf32> to vector<88x6xf32>
    %88 = tpu.concatenate %86, %87 in 1 : vector<88x2xf32>, vector<88x6xf32> -> vector<88x8xf32>
    %c0_60 = arith.constant 0 : index
    %c0_61 = arith.constant 0 : index
    %89 = vector.load %arg3[%c0_60, %c0_61] : memref<88x8xf32, #tpu.memory_space<vmem>>, vector<88x8xf32>
    tpu.vector_store %arg3[%c0_60, %c0_61], %88 {strides = array<i32>} : memref<88x8xf32, #tpu.memory_space<vmem>>, vector<88x8xf32>,
    return
  }
  func.func @transform_0(%arg0: i32) -> (i32, i32) {
    %c0_i32 = arith.constant 0 : i32
    %c0_i32_0 = arith.constant 0 : i32
    %c0_i32_1 = arith.constant 0 : i32
    return %c0_i32, %c0_i32_0 : i32, i32
  }
  func.func @transform_1(%arg0: i32) -> (i32, i32) {
    %c0_i32 = arith.constant 0 : i32
    %c0_i32_0 = arith.constant 0 : i32
    %c0_i32_1 = arith.constant 0 : i32
    return %c0_i32, %c0_i32_0 : i32, i32
  }
  func.func @transform_2(%arg0: i32) -> (i32, i32) {
    %c0_i32 = arith.constant 0 : i32
    %c0_i32_0 = arith.constant 0 : i32
    %c0_i32_1 = arith.constant 0 : i32
    return %c0_i32, %c0_i32_0 : i32, i32
  }
}

</mosaic_0001>

<bundles_post_ra>
// kernel: tile.13
= control target key start
LH: loop header
LB: loop body
LE: loop exit
PB: predicated region body
PF: predicated region fallthrough
CT: control target
= control target key end

     0   :  { %s22_s0 = inlined_call_operand.vmem [shape: f32[10], index: 0, kind: input, shape index: {}]   ;;  %s23_s1 = inlined_call_operand.vmem [shape: f32[4,10], index: 1, kind: output, shape index: {}]  }
   0x1   :  { %v4_v0 = vld [vmem:[%s22_s0] ss:$0 sm:$0xff] }
   0x2   :  { %5 = vst [vmem:[%s23_s1] sm:$0xf] %v4_v0 }

// kernel: pnet_forward.1
= control target key start
LH: loop header
LB: loop body
LE: loop exit
PB: predicated region body
PF: predicated region fallthrough
CT: control target
= control target key end

     0   :  { %s2525_s13 = smov 36   ;;  %s2526_s14 = smov 12   ;;  %vm282_vm0 = vcmask 97280   ;;  %vm300_vm1 = vcmask 195584   ;;  %vm318_vm2 = vcmask 293888   ;;  %vm337_vm3 = vcmask 392192   ;;  %s4006_s0 = inlined_call_operand.vmem [shape: f32[152,12], index: 0, kind: input, shape index: {}]   ;;  %s4007_s1 = inlined_call_operand.vmem [shape: f32[328,40], index: 1, kind: input, shape index: {}]   ;;  %s4008_s2 = inlined_call_operand.vmem [shape: f32[88,8], index: 2, kind: output, shape index: {}]  }
   0x1   :  { %v76_v0 = vld [vmem:[%s4006_s0 + $0x9] sm:$0xff]  ;;  %v75_v1 = vld [vmem:[%s4006_s0 + $0x1] sm:$0xff]  ;;  %s2527_s17 = smov 24   ;;  %v77_v4 = vld [vmem:[%s4006_s0 + $0x11] sm:$0xff]  ;;  %s2528_s21 = smov 118  }
   0x2   :  { %231 = vrot.lane.b32.xlu1 %v76_v0, %s2525_s13  ;;  %111 = vrot.lane.b32.xlu0 %v75_v1, %s2526_s14  ;;  %v2570_v2 = vld [vmem:[%s4006_s0 + $0x10] sm:$0xff]  ;;  %v2577_v3 = vld [vmem:[%s4006_s0 + $0x8] sm:$0xff]  ;;  %s2529_s22 = smov 108   ;;  %s2530_s23 = smov 20  }
   0x3   :  { %181 = vrot.lane.b32.xlu2 %v2570_v2, %s2527_s17  ;;  %v2589_v5 = vld [vmem:[%s4006_s0 + $0x18] sm:$0xff]  ;;  %v2601_v7 = vld [vmem:[%s4006_s0 + $0x20] sm:$0xff]  ;;  %v2613_v9 = vld [vmem:[%s4006_s0 + $0x28] sm:$0xff]  ;;  %s2531_s24 = smov 10   ;;  %s2532_s25 = smov 30  }
   0x4   :  { %v78_v6 = vld [vmem:[%s4006_s0 + $0x19] sm:$0xff]  ;;  %v79_v8 = vld [vmem:[%s4006_s0 + $0x21] sm:$0xff]  ;;  %v80_v10 = vld [vmem:[%s4006_s0 + $0x29] sm:$0xff]  ;;  %s2533_s26 = smov 60   ;;  %s2534_s27 = smov 40  }
   0x5   :  { %v2625_v11 = vld [vmem:[%s4006_s0 + $0x30] sm:$0xff]  ;;  %v2637_v13 = vld [vmem:[%s4006_s0 + $0x38] sm:$0xff]  ;;  %v2649_v15 = vld [vmem:[%s4006_s0 + $0x40] sm:$0xff]  ;;  %s2535_s28 = smov 50   ;;  %s2536_s29 = smov 80  }
   0x6   :  { %v81_v12 = vld [vmem:[%s4006_s0 + $0x31] sm:$0xff]  ;;  %v82_v14 = vld [vmem:[%s4006_s0 + $0x39] sm:$0xff]  ;;  %v83_v16 = vld [vmem:[%s4006_s0 + $0x41] sm:$0xff]  ;;  %s2537_s30 = smov 70  }
   0x7   :  { %v2661_v17 = vld [vmem:[%s4006_s0 + $0x48] sm:$0xff]  ;;  %v2673_v19 = vld [vmem:[%s4006_s0 + $0x50] sm:$0xff]  ;;  %v2688_v22 = vld [vmem:[%s4006_s0 + $0x58] sm:$0xff] }
   0x8   :  { %v84_v18 = vld [vmem:[%s4006_s0 + $0x49] sm:$0xff]  ;;  %v85_v21 = vld [vmem:[%s4006_s0 + $0x51] sm:$0xff]  ;;  %v86_v23 = vld [vmem:[%s4006_s0 + $0x59] sm:$0xff] }
   0x9   :  { %v16_v20 = vld [vmem:[%s4007_s1 + $0x28] sm:$0xff]  ;;  %v15_v24 = vld [vmem:[%s4007_s1 + $0x20] sm:$0xff]  ;;  %v14_v25 = vld [vmem:[%s4007_s1 + $0x18] sm:$0xff] }
   0xa   :  { %113 = vrot.lane.b32.xlu1 %v76_v0, %s2526_s14  ;;  %179 = vrot.lane.b32.xlu0 %v2577_v3, %s2527_s17  ;;  %v2706_v26 = vld [vmem:[%s4006_s0 + $0x60] sm:$0xff]  ;;  %v13_v27 = vld [vmem:[%s4007_s1 + $0x10] sm:$0xff] }
   0xb   :  { %233 = vrot.lane.b32.xlu2 %v77_v4, %s2525_s13  ;;  %399 = vmatpush.msra.mxu0 %v16_v20  ;;  %v12_v28 = vld [vmem:[%s4007_s1 + $0x8] sm:$0xff]  ;;  %v11_v30 = vld [vmem:[%s4007_s1] sm:$0xff]  ;;  %v2739_v35 = vld [vmem:[%s4006_s0 + $0x70] sm:$0xff] }
   0xc   :  { %v87_v29 = vld [vmem:[%s4006_s0 + $0x61] sm:$0xff]  ;;  %v88_v33 = vld [vmem:[%s4006_s0 + $0x69] sm:$0xff]  ;;  %v89_v36 = vld [vmem:[%s4006_s0 + $0x71] sm:$0xff] }
   0xd   :  { %400 = vmatpush.msra.mxu0 %v15_v24  ;;  %v2727_v32 = vld [vmem:[%s4006_s0 + $0x68] sm:$0xff]  ;;  %v2751_v38 = vld [vmem:[%s4006_s0 + $0x78] sm:$0xff]  ;;  %v2763_v42 = vld [vmem:[%s4006_s0 + $0x80] sm:$0xff] }
   0xe   :  { %v90_v39 = vld [vmem:[%s4006_s0 + $0x79] sm:$0xff]  ;;  %v91_v45 = vld [vmem:[%s4006_s0 + $0x81] sm:$0xff]  ;;  %v93_v54 = vld [vmem:[%s4006_s0 + $0x89] sm:$0xff] }
   0xf   :  { %401 = vmatpush.msra.mxu0 %v14_v25  ;;  %v58_v44 = vld [vmem:[%s4006_s0] sm:$0xff]  ;;  %v92_v51 = vld [vmem:[%s4006_s0 + $0x88] sm:$0xff] }
  0x11   :  { %402 = vmatpush.msra.mxu0 %v13_v27 }
  0x12   :  { %115 = vrot.lane.b32.xlu0 %v77_v4, %s2526_s14  ;;  %183 = vrot.lane.b32.xlu1 %v2589_v5, %s2527_s17 }
  0x13   :  { %235 = vrot.lane.b32.xlu2 %v78_v6, %s2525_s13  ;;  %403 = vmatpush.msra.mxu0 %v12_v28 }
  0x15   :  { %404 = vmatpush.msra.mxu0 %v11_v30 }
  0x1a   :  { %117 = vrot.lane.b32.xlu0 %v78_v6, %s2526_s14  ;;  %185 = vrot.lane.b32.xlu1 %v2601_v7, %s2527_s17 }
  0x1b   :  { %237 = vrot.lane.b32.xlu2 %v79_v8, %s2525_s13 }
  0x22   :  { %119 = vrot.lane.b32.xlu0 %v79_v8, %s2526_s14  ;;  %187 = vrot.lane.b32.xlu1 %v2613_v9, %s2527_s17 }
  0x23   :  { %239 = vrot.lane.b32.xlu2 %v80_v10, %s2525_s13 }
  0x2a   :  { %121 = vrot.lane.b32.xlu0 %v80_v10, %s2526_s14  ;;  %189 = vrot.lane.b32.xlu1 %v2625_v11, %s2527_s17 }
  0x2b   :  { %241 = vrot.lane.b32.xlu2 %v81_v12, %s2525_s13 }
  0x32   :  { %123 = vrot.lane.b32.xlu0 %v81_v12, %s2526_s14  ;;  %191 = vrot.lane.b32.xlu1 %v2637_v13, %s2527_s17 }
  0x33   :  { %243 = vrot.lane.b32.xlu2 %v82_v14, %s2525_s13 }
  0x3a   :  { %125 = vrot.lane.b32.xlu0 %v82_v14, %s2526_s14  ;;  %193 = vrot.lane.b32.xlu1 %v2649_v15, %s2527_s17 }
  0x3b   :  { %245 = vrot.lane.b32.xlu2 %v83_v16, %s2525_s13 }
  0x42   :  { %127 = vrot.lane.b32.xlu0 %v83_v16, %s2526_s14  ;;  %195 = vrot.lane.b32.xlu1 %v2661_v17, %s2527_s17 }
  0x43   :  { %247 = vrot.lane.b32.xlu2 %v84_v18, %s2525_s13 }
  0x4a   :  { %129 = vrot.lane.b32.xlu0 %v84_v18, %s2526_s14  ;;  %197 = vrot.lane.b32.xlu1 %v2673_v19, %s2527_s17 }
  0x4b   :  { %249 = vrot.lane.b32.xlu2 %v85_v21, %s2525_s13 }
  0x52   :  { %131 = vrot.lane.b32.xlu0 %v85_v21, %s2526_s14  ;;  %199 = vrot.lane.b32.xlu1 %v2688_v22, %s2527_s17 }
  0x53   :  { %251 = vrot.lane.b32.xlu2 %v86_v23, %s2525_s13 }
  0x5a   :  { %133 = vrot.lane.b32.xlu0 %v86_v23, %s2526_s14  ;;  %201 = vrot.lane.b32.xlu1 %v2706_v26, %s2527_s17 }
  0x5b   :  { %253 = vrot.lane.b32.xlu2 %v87_v29, %s2525_s13 }
  0x5d   :  { %v182_v31 = vpop.permute.xlu2 %181 }
  0x62   :  { %135 = vrot.lane.b32.xlu0 %v87_v29, %s2526_s14  ;;  %203 = vrot.lane.b32.xlu1 %v2727_v32, %s2527_s17 }
  0x63   :  { %255 = vrot.lane.b32.xlu2 %v88_v33, %s2525_s13 }
  0x65   :  { %v234_v34 = vpop.permute.xlu2 %233 }
  0x6a   :  { %137 = vrot.lane.b32.xlu0 %v88_v33, %s2526_s14  ;;  %205 = vrot.lane.b32.xlu1 %v2739_v35, %s2527_s17 }
  0x6b   :  { %257 = vrot.lane.b32.xlu2 %v89_v36, %s2525_s13 }
  0x6d   :  { %v236_v37 = vpop.permute.xlu2 %235 }
  0x72   :  { %139 = vrot.lane.b32.xlu0 %v89_v36, %s2526_s14  ;;  %207 = vrot.lane.b32.xlu1 %v2751_v38, %s2527_s17 }
  0x73   :  { %259 = vrot.lane.b32.xlu2 %v90_v39, %s2525_s13 }
  0x74   :  { %v232_v40 = vpop.permute.xlu1 %231  ;;  %v112_v41 = vpop.permute.xlu0 %111 }
  0x75   :  { %v238_v43 = vpop.permute.xlu2 %237  ;;  %v283_v46 = vsel %vm282_vm0, %v58_v44, %v112_v41 }
  0x7a   :  { %141 = vrot.lane.b32.xlu0 %v90_v39, %s2526_s14  ;;  %209 = vrot.lane.b32.xlu1 %v2763_v42, %s2527_s17 }
  0x7b   :  { %261 = vrot.lane.b32.xlu2 %v91_v45, %s2525_s13 }
  0x7c   :  { %v114_v47 = vpop.permute.xlu1 %113  ;;  %v180_v48 = vpop.permute.xlu0 %179 }
  0x7d   :  { %v301_v49 = vsel %vm300_vm1, %v283_v46, %v180_v48  ;;  %v284_v52 = vsel %vm282_vm0, %v2577_v3, %v114_v47  ;;  %v240_v53 = vpop.permute.xlu2 %239 }
  0x7e   :  { %v319_v50 = vsel %vm318_vm2, %v301_v49, %v232_v40  ;;  %v302_v55 = vsel %vm300_vm1, %v284_v52, %v182_v31 }
  0x7f   :  { %2224 = vmatmul.msk.f32.vlgmr.msra.gmra.mxu0 %vm337_vm3, %v319_v50  ;;  %v320_v58 = vsel %vm318_vm2, %v302_v55, %v234_v34 }
  0x82   :  { %143 = vrot.lane.b32.xlu0 %v91_v45, %s2526_s14  ;;  %211 = vrot.lane.b32.xlu1 %v92_v51, %s2527_s17 }
  0x83   :  { %263 = vrot.lane.b32.xlu2 %v93_v54, %s2525_s13 }
  0x84   :  { %v116_v56 = vpop.permute.xlu0 %115  ;;  %v184_v57 = vpop.permute.xlu1 %183 }
  0x85   :  { %v285_v59 = vsel %vm282_vm0, %v2570_v2, %v116_v56  ;;  %v242_v61 = vpop.permute.xlu2 %241 }
  0x86   :  { %v303_v60 = vsel %vm300_vm1, %v285_v59, %v184_v57 }
  0x87   :  { %2225 = vmatmul.msk.f32.gmra.mxu0 %vm337_vm3, %v320_v58  ;;  %v321_v62 = vsel %vm318_vm2, %v303_v60, %v236_v37 }
  0x8c   :  { %v118_v63 = vpop.permute.xlu0 %117  ;;  %v186_v0 = vpop.permute.xlu1 %185 }
  0x8d   :  { %v286_v1 = vsel %vm282_vm0, %v2589_v5, %v118_v63  ;;  %v244_v8 = vpop.permute.xlu2 %243 }
  0x8e   :  { %v304_v3 = vsel %vm300_vm1, %v286_v1, %v186_v0 }
  0x8f   :  { %2226 = vmatmul.msk.f32.gmra.mxu0 %vm337_vm3, %v321_v62  ;;  %v322_v4 = vsel %vm318_vm2, %v304_v3, %v238_v43 }
  0x94   :  { %v120_v6 = vpop.permute.xlu0 %119  ;;  %v188_v2 = vpop.permute.xlu1 %187 }
  0x95   :  { %v287_v10 = vsel %vm282_vm0, %v2601_v7, %v120_v6  ;;  %v246_v20 = vpop.permute.xlu2 %245 }
  0x96   :  { %v305_v12 = vsel %vm300_vm1, %v287_v10, %v188_v2 }
  0x97   :  { %2227 = vmatmul.msk.f32.gmra.mxu0 %vm337_vm3, %v322_v4  ;;  %v323_v14 = vsel %vm318_vm2, %v305_v12, %v240_v53 }
  0x9c   :  { %v122_v16 = vpop.permute.xlu0 %121  ;;  %v190_v5 = vpop.permute.xlu1 %189 }
  0x9d   :  { %v288_v18 = vsel %vm282_vm0, %v2613_v9, %v122_v16  ;;  %v248_v28 = vpop.permute.xlu2 %247 }
  0x9e   :  { %v306_v21 = vsel %vm300_vm1, %v288_v18, %v190_v5 }
  0x9f   :  { %2228 = vmatmul.msk.f32.gmra.mxu0 %vm337_vm3, %v323_v14  ;;  %v324_v23 = vsel %vm318_vm2, %v306_v21, %v242_v61 }
  0xa4   :  { %v124_v24 = vpop.permute.xlu0 %123  ;;  %v192_v7 = vpop.permute.xlu1 %191 }
  0xa5   :  { %v289_v25 = vsel %vm282_vm0, %v2625_v11, %v124_v24  ;;  %v250_v34 = vpop.permute.xlu2 %249 }
  0xa6   :  { %v307_v27 = vsel %vm300_vm1, %v289_v25, %v192_v7  ;;  %v2874_v7 = vld [vmem:[%s4007_s1 + $0x141] ss:$0 sm:$0xff] }
  0xa7   :  { %2229 = vmatmul.msk.f32.gmra.mxu0 %vm337_vm3, %v324_v23  ;;  %v325_v29 = vsel %vm318_vm2, %v307_v27, %v244_v8 }
  0xac   :  { %v126_v9 = vpop.permute.xlu0 %125  ;;  %v194_v30 = vpop.permute.xlu1 %193 }
  0xad   :  { %v290_v31 = vsel %vm282_vm0, %v2637_v13, %v126_v9  ;;  %v252_v44 = vpop.permute.xlu2 %251 }
  0xae   :  { %v308_v33 = vsel %vm300_vm1, %v290_v31, %v194_v30 }
  0xaf   :  { %2230 = vmatmul.msk.f32.gmra.mxu0 %vm337_vm3, %v325_v29  ;;  %v326_v36 = vsel %vm318_vm2, %v308_v33, %v246_v20 }
  0xb4   :  { %v128_v11 = vpop.permute.xlu0 %127  ;;  %v196_v37 = vpop.permute.xlu1 %195 }
  0xb5   :  { %v291_v39 = vsel %vm282_vm0, %v2649_v15, %v128_v11  ;;  %v254_v50 = vpop.permute.xlu2 %253 }
  0xb6   :  { %v309_v40 = vsel %vm300_vm1, %v291_v39, %v196_v37 }
  0xb7   :  { %2231 = vmatmul.msk.f32.gmra.mxu0 %vm337_vm3, %v326_v36  ;;  %v327_v41 = vsel %vm318_vm2, %v309_v40, %v248_v28 }
  0xbc   :  { %v130_v43 = vpop.permute.xlu0 %129  ;;  %v198_v13 = vpop.permute.xlu1 %197 }
  0xbd   :  { %v292_v45 = vsel %vm282_vm0, %v2661_v17, %v130_v43  ;;  %v256_v56 = vpop.permute.xlu2 %255 }
  0xbe   :  { %v310_v46 = vsel %vm300_vm1, %v292_v45, %v198_v13 }
  0xbf   :  { %2232 = vmatmul.msk.f32.gmra.mxu0 %vm337_vm3, %v327_v41  ;;  %v328_v47 = vsel %vm318_vm2, %v310_v46, %v250_v34 }
  0xc4   :  { %v132_v48 = vpop.permute.xlu0 %131  ;;  %v200_v15 = vpop.permute.xlu1 %199 }
  0xc5   :  { %v293_v49 = vsel %vm282_vm0, %v2673_v19, %v132_v48  ;;  %v258_v61 = vpop.permute.xlu2 %257 }
  0xc6   :  { %v311_v51 = vsel %vm300_vm1, %v293_v49, %v200_v15 }
  0xc7   :  { %2233 = vmatmul.msk.f32.gmra.mxu0 %vm337_vm3, %v328_v47  ;;  %v329_v52 = vsel %vm318_vm2, %v311_v51, %v252_v44 }
  0xcc   :  { %v134_v53 = vpop.permute.xlu0 %133  ;;  %v202_v17 = vpop.permute.xlu1 %201 }
  0xcd   :  { %v294_v54 = vsel %vm282_vm0, %v2688_v22, %v134_v53  ;;  %v260_v6 = vpop.permute.xlu2 %259 }
  0xce   :  { %v312_v55 = vsel %vm300_vm1, %v294_v54, %v202_v17 }
  0xcf   :  { %2234 = vmatmul.msk.f32.gmra.mxu0 %vm337_vm3, %v329_v52  ;;  %v330_v57 = vsel %vm318_vm2, %v312_v55, %v254_v50 }
  0xd4   :  { %v136_v19 = vpop.permute.xlu0 %135  ;;  %v204_v58 = vpop.permute.xlu1 %203 }
  0xd5   :  { %v295_v59 = vsel %vm282_vm0, %v2706_v26, %v136_v19  ;;  %v262_v16 = vpop.permute.xlu2 %261 }
  0xd6   :  { %v313_v60 = vsel %vm300_vm1, %v295_v59, %v204_v58 }
  0xd7   :  { %2235 = vmatmul.msk.f32.gmra.mxu0 %vm337_vm3, %v330_v57  ;;  %v331_v62 = vsel %vm318_vm2, %v313_v60, %v256_v56 }
  0xdc   :  { %v138_v22 = vpop.permute.xlu0 %137  ;;  %v206_v63 = vpop.permute.xlu1 %205 }
  0xdd   :  { %v296_v0 = vsel %vm282_vm0, %v2727_v32, %v138_v22  ;;  %v264_v24 = vpop.permute.xlu2 %263 }
  0xde   :  { %v314_v1 = vsel %vm300_vm1, %v296_v0, %v206_v63 }
  0xdf   :  { %2236 = vmatmul.msk.f32.gmra.mxu0 %vm337_vm3, %v331_v62  ;;  %v332_v3 = vsel %vm318_vm2, %v314_v1, %v258_v61 }
  0xe4   :  { %v140_v4 = vpop.permute.xlu0 %139  ;;  %v208_v26 = vpop.permute.xlu1 %207 }
  0xe5   :  { %v297_v2 = vsel %vm282_vm0, %v2739_v35, %v140_v4 }
  0xe6   :  { %v315_v8 = vsel %vm300_vm1, %v297_v2, %v208_v26 }
  0xe7   :  { %2237 = vmatmul.msk.f32.gmra.mxu0 %vm337_vm3, %v332_v3  ;;  %v333_v10 = vsel %vm318_vm2, %v315_v8, %v260_v6 }
  0xec   :  { %v142_v12 = vpop.permute.xlu0 %141  ;;  %v210_v32 = vpop.permute.xlu1 %209 }
  0xed   :  { %v298_v14 = vsel %vm282_vm0, %v2751_v38, %v142_v12  ;;  %v2869_v38 = vld [vmem:[%s4007_s1 + $0x140] ss:$0 sm:$0xff] }
  0xee   :  { %v316_v5 = vsel %vm300_vm1, %v298_v14, %v210_v32 }
  0xef   :  { %2238 = vmatmul.msk.f32.gmra.mxu0 %vm337_vm3, %v333_v10  ;;  %v334_v18 = vsel %vm318_vm2, %v316_v5, %v262_v16 }
  0xf4   :  { %v144_v20 = vpop.permute.xlu0 %143  ;;  %v212_v21 = vpop.permute.xlu1 %211 }
  0xf5   :  { %v299_v35 = vsel %vm282_vm0, %v2763_v42, %v144_v20 }
  0xf6   :  { %v317_v23 = vsel %vm300_vm1, %v299_v35, %v212_v21 }
  0xf7   :  { %2239 = vmatmul.msk.f32.gmra.mxu0 %vm337_vm3, %v334_v18  ;;  %v335_v27 = vsel %vm318_vm2, %v317_v23, %v264_v24 }
  0xfc   :  { %v406_v25 = vpop.f32.mrf.mxu0 }
  0xfd   :  { %v407_v42 = vadd.f32 %v2869_v38, %v406_v25 }
  0xff   :  { %v475_v28 = vmul.f32 %v2874_v7, %v407_v42  ;;  %2240 = vmatmul.msk.f32.gmra.mxu0 %vm337_vm3, %v335_v27  ;;  %vm457_vm4 = vcmp.gt.f32.partialorder %v407_v42, 0.0 }
 0x101   :  { %v2880_v29 = vsel %vm457_vm4, %v407_v42, %v475_v28 }
 0x102   :  { %526 = vrot.lane.b32.xlu0 %v2880_v29, %s2528_s21 }
 0x104   :  { %v409_v9 = vpop.f32.mrf.mxu0 }
 0x105   :  { %v410_v30 = vadd.f32 %v2869_v38, %v409_v9 }
 0x107   :  { %v476_v31 = vmul.f32 %v2874_v7, %v410_v30  ;;  %vm458_vm5 = vcmp.gt.f32.partialorder %v410_v30, 0.0 }
 0x109   :  { %v2886_v33 = vsel %vm458_vm5, %v410_v30, %v476_v31 }
 0x10a   :  { %528 = vrot.lane.b32.xlu1 %v2886_v33, %s2528_s21 }
 0x10c   :  { %v412_v34 = vpop.f32.mrf.mxu0 }
 0x10d   :  { %v413_v36 = vadd.f32 %v2869_v38, %v412_v34 }
 0x10f   :  { %v477_v11 = vmul.f32 %v2874_v7, %v413_v36  ;;  %vm459_vm6 = vcmp.gt.f32.partialorder %v413_v36, 0.0 }
 0x111   :  { %v2892_v37 = vsel %vm459_vm6, %v413_v36, %v477_v11  ;;  %vm679_vm6 = vcmask 80896  }
 0x112   :  { %530 = vrot.lane.b32.xlu2 %v2892_v37, %s2528_s21 }
 0x114   :  { %v415_v39 = vpop.f32.mrf.mxu0 }
 0x115   :  { %v416_v40 = vadd.f32 %v2869_v38, %v415_v39 }
 0x117   :  { %v478_v41 = vmul.f32 %v2874_v7, %v416_v40  ;;  %vm460_vm7 = vcmp.gt.f32.partialorder %v416_v40, 0.0 }
 0x119   :  { %v2898_v43 = vsel %vm460_vm7, %v416_v40, %v478_v41  ;;  %vm1291_vm7 = vcmask 1041408  }
 0x11a   :  { %532 = vrot.lane.b32.xlu0 %v2898_v43, %s2528_s21 }
 0x11c   :  { %v418_v13 = vpop.f32.mrf.mxu0 }
 0x11d   :  { %v419_v44 = vadd.f32 %v2869_v38, %v418_v13 }
 0x11f   :  { %v479_v45 = vmul.f32 %v2874_v7, %v419_v44  ;;  %vm461_vm8 = vcmp.gt.f32.partialorder %v419_v44, 0.0 }
 0x121   :  { %v2904_v46 = vsel %vm461_vm8, %v419_v44, %v479_v45  ;;  %vm1142_vm8 = vcmask 162816  }
 0x122   :  { %534 = vrot.lane.b32.xlu1 %v2904_v46, %s2528_s21 }
 0x124   :  { %v421_v47 = vpop.f32.mrf.mxu0 }
 0x125   :  { %v422_v48 = vadd.f32 %v2869_v38, %v421_v47 }
 0x127   :  { %v480_v15 = vmul.f32 %v2874_v7, %v422_v48  ;;  %vm462_vm9 = vcmp.gt.f32.partialorder %v422_v48, 0.0 }
 0x129   :  { %v2910_v49 = vsel %vm462_vm9, %v422_v48, %v480_v15  ;;  %vm1157_vm9 = vcmask 244736  }
 0x12a   :  { %536 = vrot.lane.b32.xlu2 %v2910_v49, %s2528_s21 }
 0x12c   :  { %v424_v50 = vpop.f32.mrf.mxu0 }
 0x12d   :  { %v425_v51 = vadd.f32 %v2869_v38, %v424_v50 }
 0x12f   :  { %v481_v52 = vmul.f32 %v2874_v7, %v425_v51  ;;  %vm463_vm10 = vcmp.gt.f32.partialorder %v425_v51, 0.0 }
 0x131   :  { %v2916_v53 = vsel %vm463_vm10, %v425_v51, %v481_v52  ;;  %vm1172_vm10 = vcmask 326656  }
 0x132   :  { %538 = vrot.lane.b32.xlu0 %v2916_v53, %s2528_s21 }
 0x134   :  { %v427_v17 = vpop.f32.mrf.mxu0 }
 0x135   :  { %v428_v54 = vadd.f32 %v2869_v38, %v427_v17 }
 0x137   :  { %v482_v55 = vmul.f32 %v2874_v7, %v428_v54  ;;  %vm464_vm11 = vcmp.gt.f32.partialorder %v428_v54, 0.0 }
 0x139   :  { %v2922_v56 = vsel %vm464_vm11, %v428_v54, %v482_v55  ;;  %vm1187_vm11 = vcmask 408576  }
 0x13a   :  { %540 = vrot.lane.b32.xlu1 %v2922_v56, %s2528_s21 }
 0x13c   :  { %v430_v57 = vpop.f32.mrf.mxu0 }
 0x13d   :  { %v431_v19 = vadd.f32 %v2869_v38, %v430_v57 }
 0x13f   :  { %v483_v58 = vmul.f32 %v2874_v7, %v431_v19  ;;  %vm465_vm12 = vcmp.gt.f32.partialorder %v431_v19, 0.0 }
 0x141   :  { %v2928_v59 = vsel %vm465_vm12, %v431_v19, %v483_v58  ;;  %vm1202_vm12 = vcmask 490496  }
 0x142   :  { %542 = vrot.lane.b32.xlu2 %v2928_v59, %s2528_s21 }
 0x144   :  { %v433_v60 = vpop.f32.mrf.mxu0 }
 0x145   :  { %v434_v61 = vadd.f32 %v2869_v38, %v433_v60 }
 0x147   :  { %v484_v62 = vmul.f32 %v2874_v7, %v434_v61  ;;  %vm466_vm13 = vcmp.gt.f32.partialorder %v434_v61, 0.0 }
 0x149   :  { %v2934_v22 = vsel %vm466_vm13, %v434_v61, %v484_v62  ;;  %vm1217_vm13 = vcmask 572416  }
 0x14a   :  { %544 = vrot.lane.b32.xlu1 %v2934_v22, %s2528_s21 }
 0x14c   :  { %v436_v63 = vpop.f32.mrf.mxu0 }
 0x14d   :  { %v437_v0 = vadd.f32 %v2869_v38, %v436_v63 }
 0x14f   :  { %v485_v1 = vmul.f32 %v2874_v7, %v437_v0  ;;  %vm467_vm14 = vcmp.gt.f32.partialorder %v437_v0, 0.0 }
 0x151   :  { %v2940_v3 = vsel %vm467_vm14, %v437_v0, %v485_v1  ;;  %vm1232_vm14 = vcmask 654336  }
 0x152   :  { %546 = vrot.lane.b32.xlu0 %v2940_v3, %s2528_s21 }
 0x154   :  { %v439_v4 = vpop.f32.mrf.mxu0 }
 0x155   :  { %v440_v26 = vadd.f32 %v2869_v38, %v439_v4 }
 0x157   :  { %v486_v6 = vmul.f32 %v2874_v7, %v440_v26  ;;  %vm468_vm15 = vcmp.gt.f32.partialorder %v440_v26, 0.0 }
 0x159   :  { %v503_v2 = vsel %vm468_vm15, %v440_v26, %v486_v6  ;;  %vm1248_vm15 = vcmask 736256  }
 0x15a   :  { %548 = vrot.lane.b32.xlu2 %v503_v2, %s2528_s21 }
 0x15c   :  { %v442_v8 = vpop.f32.mrf.mxu0 }
 0x15d   :  { %v443_v10 = vadd.f32 %v2869_v38, %v442_v8 }
 0x15f   :  { %v487_v12 = vmul.f32 %v2874_v7, %v443_v10  ;;  %vm469_vm0 = vcmp.gt.f32.partialorder %v443_v10, 0.0 }
 0x161   :  { %v2949_v32 = vsel %vm469_vm0, %v443_v10, %v487_v12 }
 0x162   :  { %550 = vrot.lane.b32.xlu1 %v2949_v32, %s2528_s21 }
 0x164   :  { %v445_v14 = vpop.f32.mrf.mxu0 }
 0x165   :  { %v446_v16 = vadd.f32 %v2869_v38, %v445_v14 }
 0x167   :  { %v488_v5 = vmul.f32 %v2874_v7, %v446_v16  ;;  %vm470_vm1 = vcmp.gt.f32.partialorder %v446_v16, 0.0 }
 0x169   :  { %v2955_v18 = vsel %vm470_vm1, %v446_v16, %v488_v5  ;;  %vm1397_vm1 = vcmask 130048  }
 0x16a   :  { %552 = vrot.lane.b32.xlu0 %v2955_v18, %s2528_s21 }
 0x16c   :  { %v448_v20 = vpop.f32.mrf.mxu0  ;;  %v531_v34 = vpop.permute.xlu2 %530 }
 0x16d   :  { %v449_v35 = vadd.f32 %v2869_v38, %v448_v20 }
 0x16f   :  { %v489_v21 = vmul.f32 %v2874_v7, %v449_v35  ;;  %vm471_vm2 = vcmp.gt.f32.partialorder %v449_v35, 0.0 }
 0x171   :  { %v506_v23 = vsel %vm471_vm2, %v449_v35, %v489_v21 }
 0x172   :  { %554 = vrot.lane.b32.xlu0 %v506_v23, %s2528_s21 }
 0x174   :  { %v451_v24 = vpop.f32.mrf.mxu0  ;;  %v527_v25 = vpop.permute.xlu0 %526 }
 0x175   :  { %v452_v27 = vadd.f32 %v2869_v38, %v451_v24  ;;  %v577_v42 = vmax.f32 %v2880_v29, %v527_v25  ;;  %v579_v29 = vmax.f32 %v2892_v37, %v531_v34 }
 0x177   :  { %v490_v28 = vmul.f32 %v2874_v7, %v452_v27  ;;  %611 = vrot.lane.b32.xlu2 %v577_v42, %s2529_s22  ;;  %vm472_vm4 = vcmp.gt.f32.partialorder %v452_v27, 0.0 }
 0x179   :  { %v507_v9 = vsel %vm472_vm4, %v452_v27, %v490_v28 }
 0x17a   :  { %556 = vrot.lane.b32.xlu1 %v507_v9, %s2528_s21 }
 0x17c   :  { %v454_v30 = vpop.f32.mrf.mxu0  ;;  %v529_v31 = vpop.permute.xlu1 %528 }
 0x17d   :  { %v455_v36 = vadd.f32 %v2869_v38, %v454_v30  ;;  %v578_v11 = vmax.f32 %v2886_v33, %v529_v31 }
 0x17f   :  { %v491_v39 = vmul.f32 %v2874_v7, %v455_v36  ;;  %613 = vrot.lane.b32.xlu0 %v578_v11, %s2529_s22  ;;  %vm473_vm5 = vcmp.gt.f32.partialorder %v455_v36, 0.0 }
 0x181   :  { %v508_v40 = vsel %vm473_vm5, %v455_v36, %v491_v39 }
 0x182   :  { %615 = vrot.lane.b32.xlu1 %v579_v29, %s2529_s22  ;;  %558 = vrot.lane.b32.xlu2 %v508_v40, %s2528_s21 }
 0x184   :  { %v537_v41 = vpop.permute.xlu2 %536 }
 0x185   :  { %v2975_v13 = vmax.f32 %v2910_v49, %v537_v41 }
 0x18a   :  { %621 = vrot.lane.b32.xlu1 %v2975_v13, %s2529_s22 }
 0x18c   :  { %v533_v38 = vpop.permute.xlu0 %532 }
 0x18d   :  { %v2980_v7 = vmax.f32 %v2898_v43, %v533_v38 }
 0x18f   :  { %617 = vrot.lane.b32.xlu0 %v2980_v7, %s2529_s22 }
 0x194   :  { %v535_v33 = vpop.permute.xlu1 %534 }
 0x195   :  { %v581_v37 = vmax.f32 %v2904_v46, %v535_v33 }
 0x197   :  { %619 = vrot.lane.b32.xlu2 %v581_v37, %s2529_s22 }
 0x19c   :  { %v543_v44 = vpop.permute.xlu2 %542 }
 0x19d   :  { %v2987_v45 = vmax.f32 %v2928_v59, %v543_v44 }
 0x19f   :  { %627 = vrot.lane.b32.xlu1 %v2987_v45, %s2529_s22 }
 0x1a4   :  { %v539_v47 = vpop.permute.xlu0 %538 }
 0x1a5   :  { %v2992_v48 = vmax.f32 %v2916_v53, %v539_v47 }
 0x1a7   :  { %623 = vrot.lane.b32.xlu0 %v2992_v48, %s2529_s22 }
 0x1ac   :  { %v541_v43 = vpop.permute.xlu1 %540 }
 0x1ad   :  { %v2997_v15 = vmax.f32 %v2922_v56, %v541_v43 }
 0x1af   :  { %625 = vrot.lane.b32.xlu2 %v2997_v15, %s2529_s22 }
 0x1b4   :  { %v549_v46 = vpop.permute.xlu2 %548 }
 0x1b5   :  { %v3001_v49 = vmax.f32 %v503_v2, %v549_v46  ;;  %v27_v46 = vld [vmem:[%s4007_s1 + $0x80] sm:$0xff] }
 0x1b7   :  { %633 = vrot.lane.b32.xlu1 %v3001_v49, %s2529_s22 }
 0x1bc   :  { %v545_v50 = vpop.permute.xlu1 %544 }
 0x1bd   :  { %v3006_v51 = vmax.f32 %v2934_v22, %v545_v50 }
 0x1bf   :  { %629 = vrot.lane.b32.xlu2 %v3006_v51, %s2529_s22 }
 0x1c4   :  { %v547_v52 = vpop.permute.xlu0 %546 }
 0x1c5   :  { %v3011_v53 = vmax.f32 %v2940_v3, %v547_v52  ;;  %v25_v52 = vld [vmem:[%s4007_s1 + $0x70] sm:$0xff] }
 0x1c7   :  { %631 = vrot.lane.b32.xlu0 %v3011_v53, %s2529_s22 }
 0x1d1   :  { %v612_v17 = vpop.permute.xlu2 %611 }
 0x1d2   :  { %v662_v54 = vmax.f32 %v577_v42, %v612_v17 }
 0x1d4   :  { %680 = vst.msk [vmem:[#allocation2] sm:$0xff] %vm679_vm6, %v662_v54  ;;  %v551_v55 = vpop.permute.xlu1 %550 }
 0x1d5   :  { %v3017_v56 = vmax.f32 %v2949_v32, %v551_v55  ;;  %v23_v55 = vld [vmem:[%s4007_s1 + $0x60] sm:$0xff] }
 0x1d7   :  { %635 = vrot.lane.b32.xlu1 %v3017_v56, %s2529_s22 }
 0x1dc   :  { %v553_v57 = vpop.permute.xlu0 %552  ;;  %v559_v60 = vpop.permute.xlu2 %558 }
 0x1dd   :  { %v3022_v19 = vmax.f32 %v2955_v18, %v553_v57  ;;  %v3035_v4 = vmax.f32 %v508_v40, %v559_v60 }
 0x1df   :  { %637 = vrot.lane.b32.xlu1 %v3022_v19, %s2529_s22 }
 0x1e4   :  { %v555_v58 = vpop.permute.xlu0 %554 }
 0x1e5   :  { %v3026_v59 = vmax.f32 %v506_v23, %v555_v58  ;;  %v21_v58 = vld [vmem:[%s4007_s1 + $0x50] sm:$0xff] }
 0x1e7   :  { %639 = vrot.lane.b32.xlu1 %v3026_v59, %s2529_s22 }
 0x1ec   :  { %v557_v61 = vpop.permute.xlu1 %556 }
 0x1ed   :  { %v3030_v62 = vmax.f32 %v507_v9, %v557_v61 }
 0x1ef   :  { %641 = vrot.lane.b32.xlu1 %v3030_v62, %s2529_s22 }
 0x1f1   :  { %v620_v22 = vpop.permute.xlu2 %619  ;;  %v614_v63 = vpop.permute.xlu0 %613 }
 0x1f2   :  { %v666_v0 = vmax.f32 %v581_v37, %v620_v22  ;;  %v663_v1 = vmax.f32 %v578_v11, %v614_v63  ;;  %v18_v63 = vld [vmem:[%s4007_s1 + $0x38] sm:$0xff] }
 0x1f4   :  { %684 = vst.msk [vmem:[#allocation2 + $0x20] sm:$0xff] %vm679_vm6, %v666_v0  ;;  %v616_v3 = vpop.permute.xlu1 %615 }
 0x1f5   :  { %681 = vst.msk [vmem:[#allocation2 + $0x8] sm:$0xff] %vm679_vm6, %v663_v1  ;;  %v664_v26 = vmax.f32 %v579_v29, %v616_v3  ;;  %v17_v1 = vld [vmem:[%s4007_s1 + $0x30] sm:$0xff] }
 0x1f7   :  { %682 = vst.msk [vmem:[#allocation2 + $0x10] sm:$0xff] %vm679_vm6, %v664_v26  ;;  %643 = vrot.lane.b32.xlu1 %v3035_v4, %s2529_s22 }
 0x1fb   :  { %v3087_v39 = vld [vmem:[#allocation2 + $0x20] sm:$0xff] }
 0x1fc   :  { %v622_v6 = vpop.permute.xlu1 %621  ;;  %v725_v2 = vld [vmem:[#allocation2 + $0x2] sm:$0xff] }
 0x1fd   :  { %v711_v8 = vld [vmem:[#allocation2 + $0x1] sm:$0xff]  ;;  %v667_v10 = vmax.f32 %v2975_v13, %v622_v6  ;;  %815 = vrot.lane.b32.xlu0 %v725_v2, %s2530_s23 }
 0x1fe   :  { %759 = vrot.lane.b32.xlu2 %v711_v8, %s2531_s24  ;;  %v3044_v12 = vld [vmem:[#allocation2 + $0x8] sm:$0xff]  ;;  %v3051_v16 = vld [vmem:[#allocation2 + $0x10] sm:$0xff] }
 0x1ff   :  { %685 = vst.msk [vmem:[#allocation2 + $0x28] sm:$0xff] %vm679_vm6, %v667_v10  ;;  %871 = vrot.lane.b32.xlu1 %v3044_v12, %s2532_s25  ;;  %v712_v5 = vld [vmem:[#allocation2 + $0x9] sm:$0xff] }
 0x200   :  { %v726_v18 = vld [vmem:[#allocation2 + $0xa] sm:$0xff] }
 0x201   :  { %v618_v32 = vpop.permute.xlu0 %617 }
 0x202   :  { %v665_v14 = vmax.f32 %v2980_v7, %v618_v32 }
 0x204   :  { %683 = vst.msk [vmem:[#allocation2 + $0x18] sm:$0xff] %vm679_vm6, %v665_v14 }
 0x205   :  { %1000 = vrot.lane.b32.xlu0 %v3051_v16, %s2533_s26 }
 0x206   :  { %914 = vrot.lane.b32.xlu2 %v712_v5, %s2534_s27  ;;  %v715_v41 = vld [vmem:[#allocation2 + $0x21] sm:$0xff] }
 0x207   :  { %957 = vrot.lane.b32.xlu1 %v726_v18, %s2535_s28  ;;  %v729_v13 = vld [vmem:[#allocation2 + $0x22] sm:$0xff] }
 0x208   :  { %v3101_v38 = vld [vmem:[#allocation2 + $0x28] sm:$0xff] }
 0x209   :  { %v626_v20 = vpop.permute.xlu2 %625 }
 0x20a   :  { %v669_v35 = vmax.f32 %v2997_v15, %v626_v20 }
 0x20b   :  { %v727_v24 = vld [vmem:[#allocation2 + $0x12] sm:$0xff]  ;;  %v728_v31 = vld [vmem:[#allocation2 + $0x1a] sm:$0xff] }
 0x20c   :  { %687 = vst.msk [vmem:[#allocation2 + $0x38] sm:$0xff] %vm679_vm6, %v669_v35  ;;  %v713_v25 = vld [vmem:[#allocation2 + $0x11] sm:$0xff]  ;;  %v714_v11 = vld [vmem:[#allocation2 + $0x19] sm:$0xff] }
 0x20d   :  { %761 = vrot.lane.b32.xlu0 %v712_v5, %s2531_s24  ;;  %v3071_v30 = vld [vmem:[#allocation2 + $0x18] sm:$0xff] }
 0x20e   :  { %873 = vrot.lane.b32.xlu2 %v3051_v16, %s2532_s25 }
 0x20f   :  { %817 = vrot.lane.b32.xlu1 %v726_v18, %s2530_s23  ;;  %v697_v18 = vld [vmem:[#allocation2] sm:$0xff] }
 0x211   :  { %v628_v21 = vpop.permute.xlu1 %627 }
 0x212   :  { %v670_v23 = vmax.f32 %v2987_v45, %v628_v21 }
 0x213   :  { %v3158_v60 = vld [vmem:[#allocation2 + $0x38] sm:$0xff] }
 0x214   :  { %688 = vst.msk [vmem:[#allocation2 + $0x40] sm:$0xff] %vm679_vm6, %v670_v23 }
 0x215   :  { %916 = vrot.lane.b32.xlu0 %v713_v25, %s2534_s27 }
 0x216   :  { %1086 = vrot.lane.b32.xlu2 %v727_v24, %s2536_s29 }
 0x217   :  { %1043 = vrot.lane.b32.xlu1 %v713_v25, %s2537_s30 }
 0x219   :  { %v630_v27 = vpop.permute.xlu2 %629  ;;  %v624_v42 = vpop.permute.xlu0 %623 }
 0x21a   :  { %v671_v28 = vmax.f32 %v3006_v51, %v630_v27  ;;  %v668_v9 = vmax.f32 %v2992_v48, %v624_v42  ;;  %v28_v48 = vld [vmem:[%s4007_s1 + $0x88] sm:$0x3] }
 0x21b   :  { %2241 = vmatpush.msk.msra.mxu1 %vm1291_vm7, %v28_v48  ;;  %v732_v26 = vld [vmem:[#allocation2 + $0x3a] sm:$0xff] }
 0x21c   :  { %689 = vst.msk [vmem:[#allocation2 + $0x48] sm:$0xff] %vm679_vm6, %v671_v28  ;;  %v3180_v8 = vld [vmem:[#allocation2 + $0x40] sm:$0xff] }
 0x21d   :  { %686 = vst.msk [vmem:[#allocation2 + $0x30] sm:$0xff] %vm679_vm6, %v668_v9  ;;  %875 = vrot.lane.b32.xlu0 %v3071_v30, %s2532_s25  ;;  %1300 = vmatpush.msra.mxu1 %v27_v46  ;;  %v718_v27 = vld [vmem:[#allocation2 + $0x39] sm:$0xff] }
 0x21e   :  { %959 = vrot.lane.b32.xlu2 %v727_v24, %s2535_s28 }
 0x21f   :  { %1002 = vrot.lane.b32.xlu1 %v3071_v30, %s2533_s26 }
 0x223   :  { %v3187_v5 = vld [vmem:[#allocation2 + $0x42] sm:$0xff] }
 0x224   :  { %v730_v37 = vld [vmem:[#allocation2 + $0x2a] sm:$0xff]  ;;  %v731_v17 = vld [vmem:[#allocation2 + $0x32] sm:$0xff] }
 0x225   :  { %1088 = vrot.lane.b32.xlu0 %v728_v31, %s2536_s29  ;;  %v716_v47 = vld [vmem:[#allocation2 + $0x29] sm:$0xff]  ;;  %v717_v3 = vld [vmem:[#allocation2 + $0x31] sm:$0xff] }
 0x226   :  { %819 = vrot.lane.b32.xlu2 %v727_v24, %s2530_s23  ;;  %v3118_v43 = vld [vmem:[#allocation2 + $0x30] sm:$0xff]  ;;  %v3199_v9 = vld [vmem:[#allocation2 + $0x48] sm:$0xff] }
 0x227   :  { %763 = vrot.lane.b32.xlu1 %v713_v25, %s2531_s24 }
 0x229   :  { %v634_v34 = vpop.permute.xlu1 %633 }
 0x22a   :  { %v673_v36 = vmax.f32 %v3001_v49, %v634_v34  ;;  %v26_v49 = vld [vmem:[%s4007_s1 + $0x78] sm:$0xff] }
 0x22b   :  { %1301 = vmatpush.msra.mxu1 %v26_v49 }
 0x22c   :  { %691 = vst.msk [vmem:[#allocation2 + $0x58] sm:$0xff] %vm679_vm6, %v673_v36 }
 0x22d   :  { %961 = vrot.lane.b32.xlu0 %v728_v31, %s2535_s28  ;;  %1302 = vmatpush.msra.mxu1 %v25_v52 }
 0x22e   :  { %1045 = vrot.lane.b32.xlu2 %v714_v11, %s2537_s30 }
 0x22f   :  { %918 = vrot.lane.b32.xlu1 %v714_v11, %s2534_s27 }
 0x235   :  { %821 = vrot.lane.b32.xlu0 %v728_v31, %s2530_s23 }
 0x236   :  { %1004 = vrot.lane.b32.xlu2 %v3087_v39, %s2533_s26 }
 0x237   :  { %877 = vrot.lane.b32.xlu1 %v3087_v39, %s2532_s25 }
 0x239   :  { %v632_v29 = vpop.permute.xlu0 %631 }
 0x23a   :  { %v672_v40 = vmax.f32 %v3011_v53, %v632_v29  ;;  %v24_v53 = vld [vmem:[%s4007_s1 + $0x68] sm:$0xff] }
 0x23b   :  { %1303 = vmatpush.msra.mxu1 %v24_v53  ;;  %v719_v53 = vld [vmem:[#allocation2 + $0x41] sm:$0xff] }
 0x23c   :  { %690 = vst.msk [vmem:[#allocation2 + $0x50] sm:$0xff] %vm679_vm6, %v672_v40 }
 0x23d   :  { %1047 = vrot.lane.b32.xlu0 %v715_v41, %s2537_s30  ;;  %1304 = vmatpush.msra.mxu1 %v23_v55 }
 0x23e   :  { %765 = vrot.lane.b32.xlu2 %v714_v11, %s2531_s24 }
 0x23f   :  { %1090 = vrot.lane.b32.xlu1 %v729_v13, %s2536_s29 }
 0x245   :  { %963 = vrot.lane.b32.xlu0 %v729_v13, %s2535_s28 }
 0x246   :  { %920 = vrot.lane.b32.xlu2 %v715_v41, %s2534_s27 }
 0x247   :  { %879 = vrot.lane.b32.xlu1 %v3101_v38, %s2532_s25 }
 0x249   :  { %v636_v7 = vpop.permute.xlu1 %635 }
 0x24a   :  { %v674_v33 = vmax.f32 %v3017_v56, %v636_v7  ;;  %v22_v56 = vld [vmem:[%s4007_s1 + $0x58] sm:$0xff]  ;;  %v3212_v7 = vld [vmem:[#allocation2 + $0x4a] sm:$0xff] }
 0x24b   :  { %1305 = vmatpush.msra.mxu1 %v22_v56 }
 0x24c   :  { %692 = vst.msk [vmem:[#allocation2 + $0x60] sm:$0xff] %vm679_vm6, %v674_v33 }
 0x24d   :  { %823 = vrot.lane.b32.xlu0 %v729_v13, %s2530_s23  ;;  %1306 = vmatpush.msra.mxu1 %v21_v58  ;;  %v3240_v58 = vld [vmem:[#allocation2 + $0x51] sm:$0xff] }
 0x24e   :  { %1006 = vrot.lane.b32.xlu2 %v3101_v38, %s2533_s26 }
 0x24f   :  { %1092 = vrot.lane.b32.xlu1 %v730_v37, %s2536_s29 }
 0x251   :  { %v638_v44 = vpop.permute.xlu1 %637 }
 0x252   :  { %v675_v45 = vmax.f32 %v3022_v19, %v638_v44 }
 0x254   :  { %693 = vst.msk [vmem:[#allocation2 + $0x68] sm:$0xff] %vm679_vm6, %v675_v45 }
 0x255   :  { %1049 = vrot.lane.b32.xlu0 %v716_v47, %s2537_s30 }
 0x256   :  { %767 = vrot.lane.b32.xlu2 %v715_v41, %s2531_s24 }
 0x257   :  { %881 = vrot.lane.b32.xlu1 %v3118_v43, %s2532_s25 }
 0x258   :  { %v3120_v15 = vpop.permute.xlu2 %759 }
 0x259   :  { %v640_v50 = vpop.permute.xlu1 %639  ;;  %v1128_v21 = vsel %vm679_vm6, %v697_v18, %v3120_v15  ;;  %v3224_v15 = vld [vmem:[#allocation2 + $0x50] sm:$0xff] }
 0x25a   :  { %v676_v51 = vmax.f32 %v3026_v59, %v640_v50  ;;  %v20_v59 = vld [vmem:[%s4007_s1 + $0x48] sm:$0xff] }
 0x25b   :  { %1307 = vmatpush.msra.mxu1 %v20_v59 }
 0x25c   :  { %694 = vst.msk [vmem:[#allocation2 + $0x70] sm:$0xff] %vm679_vm6, %v676_v51 }
 0x25d   :  { %965 = vrot.lane.b32.xlu0 %v730_v37, %s2535_s28 }
 0x25e   :  { %922 = vrot.lane.b32.xlu2 %v716_v47, %s2534_s27 }
 0x25f   :  { %1094 = vrot.lane.b32.xlu1 %v731_v17, %s2536_s29 }
 0x260   :  { %v915_v54 = vpop.permute.xlu2 %914 }
 0x261   :  { %v642_v57 = vpop.permute.xlu1 %641 }
 0x262   :  { %v677_v19 = vmax.f32 %v3030_v62, %v642_v57  ;;  %v19_v62 = vld [vmem:[%s4007_s1 + $0x40] sm:$0xff] }
 0x263   :  { %1308 = vmatpush.msra.mxu1 %v19_v62 }
 0x264   :  { %695 = vst.msk [vmem:[#allocation2 + $0x78] sm:$0xff] %vm679_vm6, %v677_v19 }
 0x265   :  { %825 = vrot.lane.b32.xlu0 %v730_v37, %s2530_s23  ;;  %1309 = vmatpush.msra.mxu1 %v18_v63 }
 0x266   :  { %1008 = vrot.lane.b32.xlu2 %v3118_v43, %s2533_s26 }
 0x267   :  { %883 = vrot.lane.b32.xlu1 %v3158_v60, %s2532_s25  ;;  %1310 = vmatpush.msra.mxu1 %v17_v1 }
 0x268   :  { %v3160_v61 = vpop.permute.xlu2 %873 }
 0x269   :  { %v644_v22 = vpop.permute.xlu1 %643 }
 0x26a   :  { %v678_v0 = vmax.f32 %v3035_v4, %v644_v22 }
 0x26c   :  { %696 = vst.msk [vmem:[#allocation2 + $0x80] sm:$0xff] %vm679_vm6, %v678_v0  ;;  %v735_v0 = vld [vmem:[#allocation2 + $0x52] sm:$0xff] }
 0x26d   :  { %1051 = vrot.lane.b32.xlu0 %v717_v3, %s2537_s30 }
 0x26e   :  { %769 = vrot.lane.b32.xlu2 %v716_v47, %s2531_s24 }
 0x26f   :  { %v816_v2 = vpop.permute.xlu0 %815  ;;  %1096 = vrot.lane.b32.xlu1 %v732_v26, %s2536_s29 }
 0x270   :  { %v1087_v6 = vpop.permute.xlu2 %1086  ;;  %v1143_v23 = vsel %vm1142_vm8, %v1128_v21, %v816_v2 }
 0x271   :  { %v872_v4 = vpop.permute.xlu1 %871 }
 0x272   :  { %v1158_v25 = vsel %vm1157_vm9, %v1143_v23, %v872_v4 }
 0x273   :  { %v1173_v42 = vsel %vm1172_vm10, %v1158_v25, %v915_v54 }
 0x275   :  { %967 = vrot.lane.b32.xlu0 %v731_v17, %s2535_s28 }
 0x276   :  { %924 = vrot.lane.b32.xlu2 %v717_v3, %s2534_s27 }
 0x277   :  { %v1001_v32 = vpop.permute.xlu0 %1000  ;;  %885 = vrot.lane.b32.xlu1 %v3180_v8, %s2532_s25 }
 0x278   :  { %v960_v10 = vpop.permute.xlu2 %959 }
 0x279   :  { %v958_v14 = vpop.permute.xlu1 %957 }
 0x27a   :  { %v1188_v28 = vsel %vm1187_vm11, %v1173_v42, %v958_v14 }
 0x27b   :  { %v1203_v11 = vsel %vm1202_vm12, %v1188_v28, %v1001_v32 }
 0x27d   :  { %827 = vrot.lane.b32.xlu0 %v731_v17, %s2530_s23  ;;  %v720_v17 = vld [vmem:[#allocation2 + $0x49] sm:$0xff] }
 0x27e   :  { %1010 = vrot.lane.b32.xlu2 %v3158_v60, %s2533_s26 }
 0x27f   :  { %v762_v35 = vpop.permute.xlu0 %761  ;;  %1098 = vrot.lane.b32.xlu1 %v3187_v5, %s2536_s29 }
 0x280   :  { %v820_v20 = vpop.permute.xlu2 %819  ;;  %v1129_v40 = vsel %vm679_vm6, %v3044_v12, %v762_v35 }
 0x281   :  { %v818_v24 = vpop.permute.xlu1 %817 }
 0x282   :  { %v1144_v13 = vsel %vm1142_vm8, %v1129_v40, %v818_v24  ;;  %v3287_v40 = vld [vmem:[#allocation2 + $0x62] sm:$0xff] }
 0x283   :  { %v1159_v33 = vsel %vm1157_vm9, %v1144_v13, %v3160_v61 }
 0x285   :  { %1053 = vrot.lane.b32.xlu0 %v718_v27, %s2537_s30 }
 0x286   :  { %771 = vrot.lane.b32.xlu2 %v717_v3, %s2531_s24 }
 0x287   :  { %v917_v34 = vpop.permute.xlu0 %916  ;;  %887 = vrot.lane.b32.xlu1 %v3199_v9, %s2532_s25 }
 0x288   :  { %v1046_v31 = vpop.permute.xlu2 %1045  ;;  %v1174_v12 = vsel %vm1172_vm10, %v1159_v33, %v917_v34 }
 0x289   :  { %v1044_v36 = vpop.permute.xlu1 %1043  ;;  %v1189_v47 = vsel %vm1187_vm11, %v1174_v12, %v960_v10  ;;  %v3258_v10 = vld [vmem:[#allocation2 + $0x59] sm:$0xff]  ;;  %v3299_v12 = vld [vmem:[#allocation2 + $0x68] sm:$0xff] }
 0x28a   :  { %v1218_v29 = vsel %vm1217_vm13, %v1203_v11, %v1044_v36 }
 0x28b   :  { %v1233_v41 = vsel %vm1232_vm14, %v1218_v29, %v1087_v6 }
 0x28c   :  { %2242 = vmatmul.msk.f32.vlgmr.msra.gmra.mxu1 %vm1248_vm15, %v1233_v41 }
 0x28d   :  { %969 = vrot.lane.b32.xlu0 %v732_v26, %s2535_s28 }
 0x28e   :  { %926 = vrot.lane.b32.xlu2 %v718_v27, %s2534_s27 }
 0x28f   :  { %v876_v44 = vpop.permute.xlu0 %875  ;;  %1100 = vrot.lane.b32.xlu1 %v3212_v7, %s2536_s29 }
 0x290   :  { %v1005_v37 = vpop.permute.xlu2 %1004 }
 0x291   :  { %v1003_v45 = vpop.permute.xlu1 %1002 }
 0x292   :  { %v1204_v48 = vsel %vm1202_vm12, %v1189_v47, %v1003_v45 }
 0x293   :  { %v1219_v50 = vsel %vm1217_vm13, %v1204_v48, %v1046_v31 }
 0x295   :  { %829 = vrot.lane.b32.xlu0 %v732_v26, %s2530_s23 }
 0x296   :  { %1012 = vrot.lane.b32.xlu2 %v3180_v8, %s2533_s26 }
 0x297   :  { %v1089_v49 = vpop.permute.xlu0 %1088  ;;  %1016 = vrot.lane.b32.xlu1 %v3224_v15, %s2533_s26 }
 0x298   :  { %v766_v46 = vpop.permute.xlu2 %765  ;;  %v1234_v51 = vsel %vm1232_vm14, %v1219_v50, %v1089_v49  ;;  %v723_v50 = vld [vmem:[#allocation2 + $0x61] sm:$0xff] }
 0x299   :  { %2243 = vmatmul.msk.f32.gmra.mxu1 %vm1248_vm15, %v1234_v51  ;;  %v764_v52 = vpop.permute.xlu1 %763  ;;  %v1131_v18 = vsel %vm679_vm6, %v3071_v30, %v766_v46  ;;  %v3276_v30 = vld [vmem:[#allocation2 + $0x60] sm:$0xff] }
 0x29a   :  { %v1130_v57 = vsel %vm679_vm6, %v3051_v16, %v764_v52 }
 0x29b   :  { %v1145_v19 = vsel %vm1142_vm8, %v1130_v57, %v820_v20  ;;  %v736_v20 = vld [vmem:[#allocation2 + $0x5a] sm:$0xff] }
 0x29c   :  { %v1160_v62 = vsel %vm1157_vm9, %v1145_v19, %v876_v44 }
 0x29d   :  { %1055 = vrot.lane.b32.xlu0 %v719_v53, %s2537_s30 }
 0x29e   :  { %773 = vrot.lane.b32.xlu2 %v718_v27, %s2531_s24 }
 0x29f   :  { %v962_v55 = vpop.permute.xlu0 %961  ;;  %777 = vrot.lane.b32.xlu1 %v720_v17, %s2531_s24 }
 0x2a0   :  { %v921_v54 = vpop.permute.xlu2 %920 }
 0x2a1   :  { %v919_v56 = vpop.permute.xlu1 %918 }
 0x2a2   :  { %v1175_v63 = vsel %vm1172_vm10, %v1160_v62, %v919_v56  ;;  %v3318_v56 = vld [vmem:[#allocation2 + $0x69] sm:$0xff] }
 0x2a3   :  { %v1190_v16 = vsel %vm1187_vm11, %v1175_v63, %v962_v55  ;;  %v738_v62 = vld [vmem:[#allocation2 + $0x6a] sm:$0xff] }
 0x2a4   :  { %v1205_v26 = vsel %vm1202_vm12, %v1190_v16, %v1005_v37  ;;  %v3293_v37 = vld [vmem:[#allocation2 + $0x58] sm:$0xff] }
 0x2a5   :  { %971 = vrot.lane.b32.xlu0 %v3187_v5, %s2535_s28 }
 0x2a6   :  { %928 = vrot.lane.b32.xlu2 %v719_v53, %s2534_s27 }
 0x2a7   :  { %v822_v61 = vpop.permute.xlu0 %821  ;;  %932 = vrot.lane.b32.xlu1 %v3240_v58, %s2534_s27 }
 0x2a8   :  { %v1007_v59 = vpop.permute.xlu2 %1006  ;;  %v1146_v35 = vsel %vm1142_vm8, %v1131_v18, %v822_v61 }
 0x2a9   :  { %v878_v22 = vpop.permute.xlu1 %877 }
 0x2aa   :  { %v1161_v24 = vsel %vm1157_vm9, %v1146_v35, %v878_v22 }
 0x2ab   :  { %v1176_v27 = vsel %vm1172_vm10, %v1161_v24, %v921_v54  ;;  %v3361_v24 = vld [vmem:[%s4007_s1 + $0x142] ss:$0 sm:$0xff] }
 0x2ad   :  { %831 = vrot.lane.b32.xlu0 %v3187_v5, %s2530_s23 }
 0x2ae   :  { %1014 = vrot.lane.b32.xlu2 %v3199_v9, %s2533_s26 }
 0x2af   :  { %v1048_v3 = vpop.permute.xlu0 %1047  ;;  %835 = vrot.lane.b32.xlu1 %v735_v0, %s2530_s23 }
 0x2b0   :  { %v768_v1 = vpop.permute.xlu2 %767  ;;  %v1220_v6 = vsel %vm1217_vm13, %v1205_v26, %v1048_v3 }
 0x2b1   :  { %v1091_v2 = vpop.permute.xlu1 %1090  ;;  %v1132_v33 = vsel %vm679_vm6, %v3087_v39, %v768_v1 }
 0x2b2   :  { %v1235_v4 = vsel %vm1232_vm14, %v1220_v6, %v1091_v2 }
 0x2b3   :  { %2244 = vmatmul.msk.f32.gmra.mxu1 %vm1248_vm15, %v1235_v4 }
 0x2b5   :  { %1057 = vrot.lane.b32.xlu0 %v720_v17, %s2537_s30 }
 0x2b6   :  { %775 = vrot.lane.b32.xlu2 %v719_v53, %s2531_s24 }
 0x2b7   :  { %v964_v14 = vpop.permute.xlu0 %963  ;;  %1061 = vrot.lane.b32.xlu1 %v3258_v10, %s2537_s30 }
 0x2b8   :  { %v923_v32 = vpop.permute.xlu2 %922  ;;  %v1191_v42 = vsel %vm1187_vm11, %v1176_v27, %v964_v14 }
 0x2b9   :  { %v880_v5 = vpop.permute.xlu1 %879  ;;  %v1206_v31 = vsel %vm1202_vm12, %v1191_v42, %v1007_v59  ;;  %v3368_v42 = vld [vmem:[%s4007_s1 + $0x143] ss:$0 sm:$0xff] }
 0x2bd   :  { %973 = vrot.lane.b32.xlu0 %v3212_v7, %s2535_s28 }
 0x2be   :  { %930 = vrot.lane.b32.xlu2 %v720_v17, %s2534_s27 }
 0x2bf   :  { %v824_v23 = vpop.permute.xlu0 %823  ;;  %977 = vrot.lane.b32.xlu1 %v736_v20, %s2535_s28 }
 0x2c0   :  { %v1009_v21 = vpop.permute.xlu2 %1008  ;;  %v1147_v44 = vsel %vm1142_vm8, %v1132_v33, %v824_v23  ;;  %v744_v23 = vld [vmem:[#allocation2 + $0x7a] sm:$0xff] }
 0x2c1   :  { %v1093_v25 = vpop.permute.xlu1 %1092  ;;  %v1162_v48 = vsel %vm1157_vm9, %v1147_v44, %v880_v5 }
 0x2c2   :  { %v1177_v39 = vsel %vm1172_vm10, %v1162_v48, %v923_v32 }
 0x2c5   :  { %889 = vrot.lane.b32.xlu0 %v3224_v15, %s2532_s25 }
 0x2c6   :  { %833 = vrot.lane.b32.xlu2 %v3212_v7, %s2530_s23 }
 0x2c7   :  { %v1050_v34 = vpop.permute.xlu0 %1049  ;;  %893 = vrot.lane.b32.xlu1 %v3276_v30, %s2532_s25 }
 0x2c8   :  { %v770_v28 = vpop.permute.xlu2 %769  ;;  %v1221_v36 = vsel %vm1217_vm13, %v1206_v31, %v1050_v34 }
 0x2c9   :  { %v882_v11 = vpop.permute.xlu1 %881  ;;  %v1236_v29 = vsel %vm1232_vm14, %v1221_v36, %v1093_v25  ;;  %v1133_v59 = vsel %vm679_vm6, %v3101_v38, %v770_v28  ;;  %v3337_v38 = vld [vmem:[#allocation2 + $0x71] sm:$0xff] }
 0x2ca   :  { %2245 = vmatmul.msk.f32.gmra.mxu1 %vm1248_vm15, %v1236_v29 }
 0x2cd   :  { %1102 = vrot.lane.b32.xlu0 %v735_v0, %s2536_s29 }
 0x2ce   :  { %1059 = vrot.lane.b32.xlu2 %v3240_v58, %s2537_s30 }
 0x2cf   :  { %v966_v13 = vpop.permute.xlu0 %965  ;;  %1106 = vrot.lane.b32.xlu1 %v3287_v40, %s2536_s29 }
 0x2d0   :  { %v925_v41 = vpop.permute.xlu2 %924  ;;  %v1192_v49 = vsel %vm1187_vm11, %v1177_v39, %v966_v13 }
 0x2d1   :  { %v1095_v7 = vpop.permute.xlu1 %1094  ;;  %v1207_v52 = vsel %vm1202_vm12, %v1192_v49, %v1009_v21 }
 0x2d5   :  { %1018 = vrot.lane.b32.xlu0 %v3293_v37, %s2533_s26 }
 0x2d6   :  { %975 = vrot.lane.b32.xlu2 %v735_v0, %s2535_s28 }
 0x2d7   :  { %v826_v47 = vpop.permute.xlu0 %825  ;;  %1022 = vrot.lane.b32.xlu1 %v3299_v12, %s2533_s26 }
 0x2d8   :  { %v1011_v45 = vpop.permute.xlu2 %1010  ;;  %v1148_v61 = vsel %vm1142_vm8, %v1133_v59, %v826_v47 }
 0x2d9   :  { %v884_v46 = vpop.permute.xlu1 %883  ;;  %v1163_v16 = vsel %vm1157_vm9, %v1148_v61, %v882_v11 }
 0x2da   :  { %v1178_v1 = vsel %vm1172_vm10, %v1163_v16, %v925_v41 }
 0x2dd   :  { %779 = vrot.lane.b32.xlu0 %v3240_v58, %s2531_s24 }
 0x2de   :  { %891 = vrot.lane.b32.xlu2 %v3293_v37, %s2532_s25 }
 0x2df   :  { %v1052_v53 = vpop.permute.xlu0 %1051  ;;  %783 = vrot.lane.b32.xlu1 %v723_v50, %s2531_s24 }
 0x2e0   :  { %v772_v51 = vpop.permute.xlu2 %771  ;;  %v1222_v17 = vsel %vm1217_vm13, %v1207_v52, %v1052_v53 }
 0x2e1   :  { %v1097_v54 = vpop.permute.xlu1 %1096  ;;  %v1237_v55 = vsel %vm1232_vm14, %v1222_v17, %v1095_v7 }
 0x2e2   :  { %2246 = vmatmul.msk.f32.gmra.mxu1 %vm1248_vm15, %v1237_v55 }
 0x2e5   :  { %934 = vrot.lane.b32.xlu0 %v3258_v10, %s2534_s27 }
 0x2e6   :  { %1104 = vrot.lane.b32.xlu2 %v736_v20, %s2536_s29 }
 0x2e7   :  { %v968_v19 = vpop.permute.xlu0 %967  ;;  %938 = vrot.lane.b32.xlu1 %v3318_v56, %s2534_s27 }
 0x2e8   :  { %v927_v57 = vpop.permute.xlu2 %926  ;;  %v1193_v3 = vsel %vm1187_vm11, %v1178_v1, %v968_v19 }
 0x2e9   :  { %v3322_v58 = vpop.permute.xlu1 %885  ;;  %v1208_v6 = vsel %vm1202_vm12, %v1193_v3, %v1011_v45  ;;  %v739_v45 = vld [vmem:[#allocation2 + $0x70] sm:$0xff] }
 0x2ed   :  { %837 = vrot.lane.b32.xlu0 %v736_v20, %s2530_s23  ;;  %v1134_v20 = vsel %vm679_vm6, %v3118_v43, %v772_v51 }
 0x2ee   :  { %1020 = vrot.lane.b32.xlu2 %v3276_v30, %s2533_s26 }
 0x2ef   :  { %v828_v63 = vpop.permute.xlu0 %827  ;;  %841 = vrot.lane.b32.xlu1 %v738_v62, %s2530_s23 }
 0x2f0   :  { %v1013_v22 = vpop.permute.xlu2 %1012  ;;  %v1149_v35 = vsel %vm1142_vm8, %v1134_v20, %v828_v63  ;;  %v743_v63 = vld [vmem:[#allocation2 + $0x79] sm:$0xff] }
 0x2f1   :  { %v1099_v0 = vpop.permute.xlu1 %1098  ;;  %v1164_v43 = vsel %vm1157_vm9, %v1149_v35, %v884_v46 }
 0x2f2   :  { %v1179_v34 = vsel %vm1172_vm10, %v1164_v43, %v927_v57 }
 0x2f5   :  { %1063 = vrot.lane.b32.xlu0 %v723_v50, %s2537_s30 }
 0x2f6   :  { %781 = vrot.lane.b32.xlu2 %v3258_v10, %s2531_s24  ;;  %v741_v10 = vld [vmem:[#allocation2 + $0x72] sm:$0xff] }
 0x2f7   :  { %v1054_v2 = vpop.permute.xlu0 %1053  ;;  %1067 = vrot.lane.b32.xlu1 %v3337_v38, %s2537_s30 }
 0x2f8   :  { %v774_v26 = vpop.permute.xlu2 %773  ;;  %v1223_v4 = vsel %vm1217_vm13, %v1208_v6, %v1054_v2 }
 0x2f9   :  { %v1238_v32 = vsel %vm1232_vm14, %v1223_v4, %v1097_v54  ;;  %v3345_v14 = vpop.permute.xlu1 %887  ;;  %v1135_v52 = vsel %vm679_vm6, %v3158_v60, %v774_v26 }
 0x2fa   :  { %2247 = vmatmul.msk.f32.gmra.mxu1 %vm1248_vm15, %v1238_v32 }
 0x2fd   :  { %979 = vrot.lane.b32.xlu0 %v3287_v40, %s2535_s28 }
 0x2fe   :  { %936 = vrot.lane.b32.xlu2 %v723_v50, %s2534_s27 }
 0x2ff   :  { %v970_v18 = vpop.permute.xlu0 %969  ;;  %983 = vrot.lane.b32.xlu1 %v741_v10, %s2535_s28 }
 0x300   :  { %v929_v5 = vpop.permute.xlu2 %928  ;;  %v1194_v36 = vsel %vm1187_vm11, %v1179_v34, %v970_v18 }
 0x301   :  { %v1101_v21 = vpop.permute.xlu1 %1100  ;;  %v1209_v41 = vsel %vm1202_vm12, %v1194_v36, %v1013_v22 }
 0x305   :  { %895 = vrot.lane.b32.xlu0 %v3299_v12, %s2532_s25 }
 0x306   :  { %839 = vrot.lane.b32.xlu2 %v3287_v40, %s2530_s23  ;;  %s2538_s23 = smov 32  }
 0x307   :  { %v830_v27 = vpop.permute.xlu0 %829  ;;  %1112 = vrot.lane.b32.xlu1 %v744_v23, %s2536_s29 }
 0x308   :  { %v1015_v25 = vpop.permute.xlu2 %1014  ;;  %v1150_v53 = vsel %vm1142_vm8, %v1135_v52, %v830_v27 }
 0x309   :  { %v1312_v28 = vpop.f32.mrf.mxu1  ;;  %v1017_v7 = vpop.permute.xlu1 %1016  ;;  %v1165_v55 = vsel %vm1157_vm9, %v1150_v53, %v3322_v58  ;;  %v742_v58 = vld [vmem:[#allocation2 + $0x78] sm:$0xff] }
 0x30a   :  { %v1313_v31 = vadd.f32 %v3361_v24, %v1312_v28  ;;  %v1180_v57 = vsel %vm1172_vm10, %v1165_v55, %v929_v5 }
 0x30c   :  { %vm1354_vm0 = vcmp.gt.f32.partialorder %v1313_v31, 0.0  ;;  %v1369_v11 = vmul.f32 %v3368_v42, %v1313_v31 }
 0x30d   :  { %1108 = vrot.lane.b32.xlu0 %v738_v62, %s2536_s29 }
 0x30e   :  { %1065 = vrot.lane.b32.xlu2 %v3318_v56, %s2537_s30  ;;  %v1383_v29 = vsel %vm1354_vm0, %v1313_v31, %v1369_v11 }
 0x30f   :  { %1398 = vst.msk [vmem:[#allocation3] sm:$0xff] %vm1397_vm1, %v1383_v29  ;;  %v1056_v13 = vpop.permute.xlu0 %1055 }
 0x310   :  { %v776_v40 = vpop.permute.xlu2 %775  ;;  %v1224_v33 = vsel %vm1217_vm13, %v1209_v41, %v1056_v13 }
 0x311   :  { %v1239_v44 = vsel %vm1232_vm14, %v1224_v33, %v1099_v0  ;;  %v778_v50 = vpop.permute.xlu1 %777 }
 0x312   :  { %2248 = vmatmul.msk.f32.gmra.mxu1 %vm1248_vm15, %v1239_v44 }
 0x315   :  { %1024 = vrot.lane.b32.xlu0 %v739_v45, %s2533_s26 }
 0x316   :  { %981 = vrot.lane.b32.xlu2 %v738_v62, %s2535_s28  ;;  %v1315_v47 = vpop.f32.mrf.mxu1  ;;  %s2543_s28 = smov 112  }
 0x317   :  { %v1316_v48 = vadd.f32 %v3361_v24, %v1315_v47  ;;  %v972_v39 = vpop.permute.xlu0 %971 }
 0x318   :  { %v931_v46 = vpop.permute.xlu2 %930  ;;  %v1195_v19 = vsel %vm1187_vm11, %v1180_v57, %v972_v39 }
 0x319   :  { %vm1355_vm2 = vcmp.gt.f32.partialorder %v1316_v48, 0.0  ;;  %v1370_v49 = vmul.f32 %v3368_v42, %v1316_v48  ;;  %v933_v59 = vpop.permute.xlu1 %932  ;;  %v1210_v61 = vsel %vm1202_vm12, %v1195_v19, %v1015_v25 }
 0x31b   :  { %v1384_v51 = vsel %vm1355_vm2, %v1316_v48, %v1370_v49 }
 0x31c   :  { %1399 = vst.msk [vmem:[#allocation3 + $0x8] sm:$0xff] %vm1397_vm1, %v1384_v51 }
 0x31d   :  { %785 = vrot.lane.b32.xlu0 %v3318_v56, %s2531_s24  ;;  %s2539_s24 = smov 16  }
 0x31e   :  { %897 = vrot.lane.b32.xlu2 %v739_v45, %s2532_s25  ;;  %s2540_s25 = smov 48  }
 0x31f   :  { %v832_v54 = vpop.permute.xlu0 %831 }
 0x320   :  { %v834_v17 = vpop.permute.xlu2 %833 }
 0x321   :  { %v3406_v16 = vpop.permute.xlu1 %835 }
 0x323   :  { %v1423_v23 = vld [vmem:[#allocation3 + $0x1] sm:$0xff] }
 0x324   :  { %v3421_v25 = vld [vmem:[#allocation3 + $0x8] sm:$0xff] }
 0x325   :  { %940 = vrot.lane.b32.xlu0 %v3337_v38, %s2534_s27  ;;  %v1136_v38 = vsel %vm679_vm6, %v3180_v8, %v776_v40  ;;  %v1137_v40 = vsel %vm679_vm6, %v3199_v9, %v778_v50  ;;  %s2542_s27 = smov 96  }
 0x326   :  { %1110 = vrot.lane.b32.xlu2 %v741_v10, %s2536_s29  ;;  %v1151_v6 = vsel %vm1142_vm8, %v1136_v38, %v832_v54  ;;  %v1152_v13 = vsel %vm1142_vm8, %v1137_v40, %v834_v17 }
 0x327   :  { %v1058_v62 = vpop.permute.xlu0 %1057  ;;  %v1166_v4 = vsel %vm1157_vm9, %v1151_v6, %v3345_v14 }
 0x328   :  { %v1060_v60 = vpop.permute.xlu2 %1059  ;;  %v1225_v56 = vsel %vm1217_vm13, %v1210_v61, %v1058_v62  ;;  %v1181_v18 = vsel %vm1172_vm10, %v1166_v4, %v931_v46 }
 0x329   :  { %v1240_v22 = vsel %vm1232_vm14, %v1225_v56, %v1101_v21  ;;  %v1062_v20 = vpop.permute.xlu1 %1061  ;;  %v1434_v21 = vld [vmem:[#allocation3 + $0x2] sm:$0xff] }
 0x32a   :  { %2249 = vmatmul.msk.f32.gmra.mxu1 %vm1248_vm15, %v1240_v22 }
 0x32d   :  { %1069 = vrot.lane.b32.xlu0 %v743_v63, %s2537_s30 }
 0x32e   :  { %1026 = vrot.lane.b32.xlu2 %v742_v58, %s2533_s26  ;;  %s2541_s26 = smov 64  }
 0x32f   :  { %v974_v1 = vpop.permute.xlu0 %973 }
 0x330   :  { %v976_v0 = vpop.permute.xlu2 %975  ;;  %v1318_v3 = vpop.f32.mrf.mxu1  ;;  %v1196_v8 = vsel %vm1187_vm11, %v1181_v18, %v974_v1 }
 0x331   :  { %v1319_v26 = vadd.f32 %v3361_v24, %v1318_v3  ;;  %v1211_v35 = vsel %vm1202_vm12, %v1196_v8, %v1017_v7  ;;  %v978_v33 = vpop.permute.xlu1 %977 }
 0x332   :  { %v1226_v29 = vsel %vm1217_vm13, %v1211_v35, %v1060_v60 }
 0x333   :  { %vm1356_vm4 = vcmp.gt.f32.partialorder %v1319_v26, 0.0  ;;  %v1371_v2 = vmul.f32 %v3368_v42, %v1319_v26 }
 0x335   :  { %v1385_v32 = vsel %vm1356_vm4, %v1319_v26, %v1371_v2 }
 0x336   :  { %1400 = vst.msk [vmem:[#allocation3 + $0x10] sm:$0xff] %vm1397_vm1, %v1385_v32 }
 0x337   :  { %v890_v5 = vpop.permute.xlu0 %889 }
 0x338   :  { %v3416_v10 = vpop.permute.xlu2 %891  ;;  %v1167_v7 = vsel %vm1157_vm9, %v1152_v13, %v890_v5 }
 0x339   :  { %v1182_v9 = vsel %vm1172_vm10, %v1167_v7, %v933_v59  ;;  %v894_v53 = vpop.permute.xlu1 %893 }
 0x33a   :  { %v1197_v48 = vsel %vm1187_vm11, %v1182_v9, %v976_v0 }
 0x33d   :  { %v1435_v27 = vld [vmem:[#allocation3 + $0xa] sm:$0xff] }
 0x33e   :  { %v1424_v43 = vld [vmem:[#allocation3 + $0x9] sm:$0xff]  ;;  %v2304_v28 = vpack.i.bf16 %v1435_v27, %v1434_v21 }
 0x33f   :  { %v3423_v14 = vld [vmem:[#allocation3 + $0x10] sm:$0xff]  ;;  %v2299_v31 = vpack.i.bf16 %v1424_v43, %v1423_v23  ;;  %v1103_v11 = vpop.permute.xlu0 %1102 }
 0x340   :  { %v2309_v34 = vpack.i.bf16 %v3423_v14, %v3421_v25  ;;  %v1105_v36 = vpop.permute.xlu2 %1104  ;;  %2305 = vrot.lane.b32.xlu0 %v2304_v28, %s2538_s23  ;;  %v1241_v41 = vsel %vm1232_vm14, %v1226_v29, %v1103_v11 }
 0x341   :  { %2300 = vrot.lane.b32.xlu2 %v2299_v31, %s2539_s24  ;;  %2250 = vmatmul.msk.f32.gmra.mxu1 %vm1248_vm15, %v1241_v41  ;;  %v1107_v62 = vpop.permute.xlu1 %1106 }
 0x342   :  { %2310 = vrot.lane.b32.xlu1 %v2309_v34, %s2540_s25 }
 0x347   :  { %v1321_v45 = vpop.f32.mrf.mxu1  ;;  %v1019_v46 = vpop.permute.xlu0 %1018 }
 0x348   :  { %v1021_v44 = vpop.permute.xlu2 %1020  ;;  %v1322_v47 = vadd.f32 %v3361_v24, %v1321_v45  ;;  %v1212_v39 = vsel %vm1202_vm12, %v1197_v48, %v1019_v46 }
 0x349   :  { %v1227_v50 = vsel %vm1217_vm13, %v1212_v39, %v1062_v20  ;;  %v1023_v38 = vpop.permute.xlu1 %1022 }
 0x34a   :  { %vm1357_vm5 = vcmp.gt.f32.partialorder %v1322_v47, 0.0  ;;  %v1372_v49 = vmul.f32 %v3368_v42, %v1322_v47  ;;  %v1242_v51 = vsel %vm1232_vm14, %v1227_v50, %v1105_v36 }
 0x34b   :  { %2251 = vmatmul.msk.f32.gmra.mxu1 %vm1248_vm15, %v1242_v51 }
 0x34c   :  { %v1386_v52 = vsel %vm1357_vm5, %v1322_v47, %v1372_v49 }
 0x34d   :  { %1401 = vst.msk [vmem:[#allocation3 + $0x18] sm:$0xff] %vm1397_vm1, %v1386_v52 }
 0x34f   :  { %v780_v54 = vpop.permute.xlu0 %779 }
 0x350   :  { %v782_v17 = vpop.permute.xlu2 %781  ;;  %v1138_v58 = vsel %vm679_vm6, %v3224_v15, %v780_v54 }
 0x351   :  { %v1153_v63 = vsel %vm1142_vm8, %v1138_v58, %v3406_v16  ;;  %v784_v8 = vpop.permute.xlu1 %783  ;;  %v1139_v28 = vsel %vm679_vm6, %v3293_v37, %v782_v17 }
 0x352   :  { %v1168_v26 = vsel %vm1157_vm9, %v1153_v63, %v3416_v10  ;;  %v1140_v48 = vsel %vm679_vm6, %v3276_v30, %v784_v8 }
 0x354   :  { %v3446_v55 = vld [vmem:[#allocation3 + $0x12] sm:$0xff] }
 0x355   :  { %v1425_v57 = vld [vmem:[#allocation3 + $0x11] sm:$0xff]  ;;  %v2319_v59 = vpack.i.bf16 %v3446_v55, %v1435_v27 }
 0x356   :  { %v3448_v19 = vld [vmem:[#allocation3 + $0x18] sm:$0xff]  ;;  %v2314_v60 = vpack.i.bf16 %v1425_v57, %v1424_v43 }
 0x357   :  { %v2324_v61 = vpack.i.bf16 %v3448_v19, %v3423_v14  ;;  %2320 = vrot.lane.b32.xlu0 %v2319_v59, %s2536_s29  ;;  %v935_v22 = vpop.permute.xlu0 %934 }
 0x358   :  { %2315 = vrot.lane.b32.xlu2 %v2314_v60, %s2541_s26  ;;  %v937_v56 = vpop.permute.xlu2 %936  ;;  %v1183_v6 = vsel %vm1172_vm10, %v1168_v26, %v935_v22 }
 0x359   :  { %2325 = vrot.lane.b32.xlu1 %v2324_v61, %s2542_s27  ;;  %v1198_v15 = vsel %vm1187_vm11, %v1183_v6, %v978_v33  ;;  %v939_v36 = vpop.permute.xlu1 %938 }
 0x35a   :  { %v1213_v16 = vsel %vm1202_vm12, %v1198_v15, %v1021_v44 }
 0x35f   :  { %v1324_v0 = vpop.f32.mrf.mxu1  ;;  %v838_v3 = vpop.permute.xlu0 %837 }
 0x360   :  { %v1325_v1 = vadd.f32 %v3361_v24, %v1324_v0  ;;  %v840_v2 = vpop.permute.xlu2 %839  ;;  %v1154_v31 = vsel %vm1142_vm8, %v1139_v28, %v838_v3 }
 0x361   :  { %v1169_v11 = vsel %vm1157_vm9, %v1154_v31, %v894_v53  ;;  %v842_v47 = vpop.permute.xlu1 %841  ;;  %v1155_v50 = vsel %vm1142_vm8, %v1140_v48, %v840_v2  ;;  %v43_v2 = vld [vmem:[%s4007_s1 + $0x100] sm:$0xff]  ;;  %v34_v48 = vld [vmem:[%s4007_s1 + $0xb8] sm:$0xff] }
 0x362   :  { %vm1358_vm7 = vcmp.gt.f32.partialorder %v1325_v1, 0.0  ;;  %v1373_v4 = vmul.f32 %v3368_v42, %v1325_v1  ;;  %v1184_v33 = vsel %vm1172_vm10, %v1169_v11, %v937_v56 }
 0x364   :  { %v1387_v32 = vsel %vm1358_vm7, %v1325_v1, %v1373_v4  ;;  %v44_v1 = vld [vmem:[%s4007_s1 + $0x108] sm:$0xff]  ;;  %v3528_v4 = vld [vmem:[%s4007_s1 + $0x118] sm:$0xff] }
 0x365   :  { %1402 = vst.msk [vmem:[#allocation3 + $0x20] sm:$0xff] %vm1397_vm1, %v1387_v32  ;;  %1824 = vmatpush.msra.mxu2 %v44_v1  ;;  %2278 = vmatpush.msra.mxu3 %v3528_v4 }
 0x367   :  { %v1064_v5 = vpop.permute.xlu0 %1063  ;;  %1825 = vmatpush.msra.mxu2 %v43_v2 }
 0x368   :  { %v1228_v18 = vsel %vm1217_vm13, %v1213_v16, %v1064_v5  ;;  %v1066_v10 = vpop.permute.xlu2 %1065  ;;  %v42_v16 = vld [vmem:[%s4007_s1 + $0xf8] sm:$0xff]  ;;  %v45_v5 = vld [vmem:[%s4007_s1 + $0x110] sm:$0xff] }
 0x369   :  { %v1243_v20 = vsel %vm1232_vm14, %v1228_v18, %v1107_v62  ;;  %v1068_v56 = vpop.permute.xlu1 %1067  ;;  %1826 = vmatpush.msra.mxu2 %v42_v16  ;;  %2279 = vmatpush.msra.mxu3 %v45_v5 }
 0x36a   :  { %2252 = vmatmul.msk.f32.gmra.mxu1 %vm1248_vm15, %v1243_v20 }
 0x36c   :  { %v3471_v35 = vld [vmem:[#allocation3 + $0x1a] sm:$0xff] }
 0x36d   :  { %v1426_v21 = vld [vmem:[#allocation3 + $0x19] sm:$0xff]  ;;  %v2339_v23 = vpack.i.bf16 %v3471_v35, %v3446_v55 }
 0x36e   :  { %v2334_v27 = vpack.i.bf16 %v1426_v21, %v1425_v57  ;;  %v3481_v34 = vld [vmem:[#allocation3 + $0x20] sm:$0xff] }
 0x36f   :  { %2340 = vrot.lane.b32.xlu1 %v2339_v23, %s2538_s23  ;;  %v980_v43 = vpop.permute.xlu0 %979  ;;  %v2344_v40 = vpack.i.bf16 %v3481_v34, %v3448_v19 }
 0x370   :  { %2335 = vrot.lane.b32.xlu0 %v2334_v27, %s2539_s24  ;;  %2330 = vrot.lane.b32.xlu2 %v2334_v27, %s2543_s28  ;;  %v982_v29 = vpop.permute.xlu2 %981  ;;  %v1199_v37 = vsel %vm1187_vm11, %v1184_v33, %v980_v43  ;;  %v38_v43 = vld [vmem:[%s4007_s1 + $0xd8] sm:$0xff]  ;;  %v36_v33 = vld [vmem:[%s4007_s1 + $0xc8] sm:$0xff] }
 0x371   :  { %v1214_v45 = vsel %vm1202_vm12, %v1199_v37, %v1023_v38  ;;  %v984_v20 = vpop.permute.xlu1 %983 }
 0x372   :  { %v1229_v49 = vsel %vm1217_vm13, %v1214_v45, %v1066_v10  ;;  %v40_v10 = vld [vmem:[%s4007_s1 + $0xe8] sm:$0xff]  ;;  %v35_v45 = vld [vmem:[%s4007_s1 + $0xc0] sm:$0xff] }
 0x377   :  { %v1327_v41 = vpop.f32.mrf.mxu1  ;;  %v896_v7 = vpop.permute.xlu0 %895 }
 0x378   :  { %2345 = vrot.lane.b32.xlu2 %v2344_v40, %s2540_s25  ;;  %v1328_v13 = vadd.f32 %v3361_v24, %v1327_v41  ;;  %v898_v46 = vpop.permute.xlu2 %897  ;;  %v1170_v52 = vsel %vm1157_vm9, %v1155_v50, %v896_v7  ;;  %v37_v40 = vld [vmem:[%s4007_s1 + $0xd0] sm:$0xff] }
 0x379   :  { %v1185_v57 = vsel %vm1172_vm10, %v1170_v52, %v939_v36  ;;  %v1113_v37 = vpop.permute.xlu1 %1112 }
 0x37a   :  { %vm1359_vm0 = vcmp.gt.f32.partialorder %v1328_v13, 0.0  ;;  %v1374_v9 = vmul.f32 %v3368_v42, %v1328_v13  ;;  %v1200_v61 = vsel %vm1187_vm11, %v1185_v57, %v982_v29 }
 0x37c   :  { %v1388_v44 = vsel %vm1359_vm0, %v1328_v13, %v1374_v9 }
 0x37d   :  { %1403 = vst.msk [vmem:[#allocation3 + $0x28] sm:$0xff] %vm1397_vm1, %v1388_v44 }
 0x37f   :  { %v1109_v39 = vpop.permute.xlu0 %1108 }
 0x380   :  { %v1244_v51 = vsel %vm1232_vm14, %v1229_v49, %v1109_v39  ;;  %v1111_v58 = vpop.permute.xlu2 %1110 }
 0x381   :  { %2253 = vmatmul.msk.f32.gmra.mxu1 %vm1248_vm15, %v1244_v51  ;;  %v32_v51 = vld [vmem:[%s4007_s1 + $0xa8] sm:$0xff] }
 0x384   :  { %v3500_v53 = vld [vmem:[#allocation3 + $0x22] sm:$0xff] }
 0x385   :  { %v1427_v17 = vld [vmem:[#allocation3 + $0x21] sm:$0xff]  ;;  %v2354_v30 = vpack.i.bf16 %v3500_v53, %v3471_v35 }
 0x386   :  { %v3502_v54 = vld [vmem:[#allocation3 + $0x28] sm:$0xff]  ;;  %v2349_v59 = vpack.i.bf16 %v1427_v17, %v1426_v21  ;;  %v39_v21 = vld [vmem:[%s4007_s1 + $0xe0] sm:$0xff] }
 0x387   :  { %v2359_v60 = vpack.i.bf16 %v3502_v54, %v3481_v34  ;;  %2355 = vrot.lane.b32.xlu1 %v2354_v30, %s2536_s29  ;;  %v1025_v62 = vpop.permute.xlu0 %1024  ;;  %v30_v30 = vld [vmem:[%s4007_s1 + $0x98] sm:$0xff] }
 0x388   :  { %2350 = vrot.lane.b32.xlu0 %v2349_v59, %s2541_s26  ;;  %v1215_v22 = vsel %vm1202_vm12, %v1200_v61, %v1025_v62  ;;  %v1027_v41 = vpop.permute.xlu2 %1026  ;;  %v29_v59 = vld [vmem:[%s4007_s1 + $0x90] sm:$0xff] }
 0x389   :  { %2360 = vrot.lane.b32.xlu2 %v2359_v60, %s2542_s27  ;;  %v1230_v63 = vsel %vm1217_vm13, %v1215_v22, %v1068_v56 }
 0x38a   :  { %v1245_v0 = vsel %vm1232_vm14, %v1230_v63, %v1111_v58 }
 0x38b   :  { %2254 = vmatmul.msk.f32.gmra.mxu1 %vm1248_vm15, %v1245_v0 }
 0x38f   :  { %v1330_v3 = vpop.f32.mrf.mxu1  ;;  %v786_v26 = vpop.permute.xlu0 %785 }
 0x390   :  { %v1331_v38 = vadd.f32 %v3361_v24, %v1330_v3  ;;  %v1141_v32 = vsel %vm679_vm6, %v3299_v12, %v786_v26  ;;  %v41_v12 = vld [vmem:[%s4007_s1 + $0xf0] sm:$0xff] }
 0x391   :  { %v1156_v18 = vsel %vm1142_vm8, %v1141_v32, %v842_v47  ;;  %1827 = vmatpush.msra.mxu2 %v41_v12  ;;  %v1412_v32 = vld [vmem:[#allocation3] sm:$0xff] }
 0x392   :  { %vm1360_vm2 = vcmp.gt.f32.partialorder %v1331_v38, 0.0  ;;  %v1375_v6 = vmul.f32 %v3368_v42, %v1331_v38  ;;  %v1171_v23 = vsel %vm1157_vm9, %v1156_v18, %v898_v46  ;;  %v33_v46 = vld [vmem:[%s4007_s1 + $0xb0] sm:$0xff]  ;;  %vm1730_vm9 = vcmask 261120  }
 0x393   :  { %1828 = vmatpush.msra.mxu2 %v40_v10 }
 0x394   :  { %v1389_v15 = vsel %vm1360_vm2, %v1331_v38, %v1375_v6 }
 0x395   :  { %1404 = vst.msk [vmem:[#allocation3 + $0x30] sm:$0xff] %vm1397_vm1, %v1389_v15  ;;  %1829 = vmatpush.msra.mxu2 %v39_v21 }
 0x397   :  { %v941_v8 = vpop.permute.xlu0 %940  ;;  %1830 = vmatpush.msra.mxu2 %v38_v43 }
 0x398   :  { %v1186_v27 = vsel %vm1172_vm10, %v1171_v23, %v941_v8  ;;  %vm1753_vm10 = vcmask 523264  }
 0x399   :  { %v1201_v36 = vsel %vm1187_vm11, %v1186_v27, %v984_v20  ;;  %1831 = vmatpush.msra.mxu2 %v37_v40  ;;  %vm1776_vm11 = vcmask 785408  }
 0x39a   :  { %v1216_v13 = vsel %vm1202_vm12, %v1201_v36, %v1027_v41  ;;  %vm1788_vm12 = vcmask 916480  }
 0x39b   :  { %1832 = vmatpush.msra.mxu2 %v36_v33  ;;  %v2301_v63 = vpop.permute.xlu2 %2300 }
 0x39c   :  { %v3555_v28 = vld [vmem:[#allocation3 + $0x2a] sm:$0xff]  ;;  %v2302_v38 = vunpack.i.l.bf16 %v2301_v63  ;;  %v2303_v15 = vunpack.i.h.bf16 %v2301_v63 }
 0x39d   :  { %v1428_v31 = vld [vmem:[#allocation3 + $0x29] sm:$0xff]  ;;  %v2374_v11 = vpack.i.bf16 %v3555_v28, %v3500_v53  ;;  %1833 = vmatpush.msra.mxu2 %v35_v45 }
 0x39e   :  { %v2369_v29 = vpack.i.bf16 %v1428_v31, %v1427_v17  ;;  %v3576_v47 = vld [vmem:[#allocation3 + $0x30] sm:$0xff]  ;;  %v31_v17 = vld [vmem:[%s4007_s1 + $0xa0] sm:$0xff]  ;;  %v1720_v8 = vsel %vm1397_vm1, %v3421_v25, %v2303_v15 }
 0x39f   :  { %2375 = vrot.lane.b32.xlu2 %v2374_v11, %s2538_s23  ;;  %v1070_v7 = vpop.permute.xlu0 %1069  ;;  %v2379_v39 = vpack.i.bf16 %v3576_v47, %v3502_v54  ;;  %1834 = vmatpush.msra.mxu2 %v34_v48 }
 0x3a0   :  { %2370 = vrot.lane.b32.xlu1 %v2369_v29, %s2539_s24  ;;  %2365 = vrot.lane.b32.xlu0 %v2369_v29, %s2543_s28  ;;  %v1231_v9 = vsel %vm1217_vm13, %v1216_v13, %v1070_v7 }
 0x3a1   :  { %v1246_v44 = vsel %vm1232_vm14, %v1231_v9, %v1113_v37  ;;  %1835 = vmatpush.msra.mxu2 %v33_v46 }
 0x3a2   :  { %2255 = vmatmul.msk.f32.gmra.mxu1 %vm1248_vm15, %v1246_v44 }
 0x3a3   :  { %1836 = vmatpush.msra.mxu2 %v32_v51 }
 0x3a5   :  { %1837 = vmatpush.msra.mxu2 %v31_v17 }
 0x3a7   :  { %v1333_v49 = vpop.f32.mrf.mxu1  ;;  %1838 = vmatpush.msra.mxu2 %v30_v30 }
 0x3a8   :  { %2380 = vrot.lane.b32.xlu0 %v2379_v39, %s2540_s25  ;;  %v1334_v50 = vadd.f32 %v3361_v24, %v1333_v49 }
 0x3a9   :  { %1839 = vmatpush.msra.mxu2 %v29_v59 }
 0x3aa   :  { %vm1361_vm6 = vcmp.gt.f32.partialorder %v1334_v50, 0.0  ;;  %v1376_v52 = vmul.f32 %v3368_v42, %v1334_v50 }
 0x3ab   :  { %1888 = vmatpush.msrb.mxu2 %v3528_v4 }
 0x3ac   :  { %v1390_v57 = vsel %vm1361_vm6, %v1334_v50, %v1376_v52 }
 0x3ad   :  { %1405 = vst.msk [vmem:[#allocation3 + $0x38] sm:$0xff] %vm1397_vm1, %v1390_v57  ;;  %1889 = vmatpush.msrb.mxu2 %v45_v5  ;;  %v1719_v5 = vsel %vm1397_vm1, %v1412_v32, %v2302_v38 }
 0x3b2   :  { %v2306_v0 = vpop.permute.xlu0 %2305  ;;  %v2316_v4 = vpop.permute.xlu2 %2315 }
 0x3b3   :  { %v2307_v6 = vunpack.i.l.bf16 %v2306_v0  ;;  %v2308_v12 = vunpack.i.h.bf16 %v2306_v0  ;;  %v2317_v27 = vunpack.i.l.bf16 %v2316_v4  ;;  %v2318_v39 = vunpack.i.h.bf16 %v2316_v4 }
 0x3b4   :  { %v1440_v60 = vld [vmem:[#allocation3 + $0x32] sm:$0xff]  ;;  %v2311_v26 = vpop.permute.xlu1 %2310 }
 0x3b5   :  { %v1429_v61 = vld [vmem:[#allocation3 + $0x31] sm:$0xff]  ;;  %v2389_v56 = vpack.i.bf16 %v1440_v60, %v3555_v28  ;;  %2260 = vmatmul.msk.f32.vlgmr.msra.gmra.mxu3 %vm1397_vm1, %v1440_v60  ;;  %v2312_v18 = vunpack.i.l.bf16 %v2311_v26  ;;  %v1731_v20 = vsel %vm1730_vm9, %v1719_v5, %v2307_v6  ;;  %v2313_v10 = vunpack.i.h.bf16 %v2311_v26 }
 0x3b6   :  { %v3603_v62 = vld [vmem:[#allocation3 + $0x38] sm:$0xff]  ;;  %v2384_v22 = vpack.i.bf16 %v1429_v61, %v1428_v31  ;;  %v1732_v21 = vsel %vm1730_vm9, %v1720_v8, %v2308_v12 }
 0x3b7   :  { %v2394_v58 = vpack.i.bf16 %v3603_v62, %v3576_v47  ;;  %2390 = vrot.lane.b32.xlu2 %v2389_v56, %s2536_s29  ;;  %v1742_v23 = vsel %vm337_vm3, %v1731_v20, %v2312_v18  ;;  %v1743_v41 = vsel %vm337_vm3, %v1732_v21, %v2313_v10 }
 0x3b8   :  { %2385 = vrot.lane.b32.xlu1 %v2384_v22, %s2541_s26  ;;  %v1754_v33 = vsel %vm1753_vm10, %v1742_v23, %v2317_v27  ;;  %v1755_v17 = vsel %vm1753_vm10, %v1743_v41, %v2318_v39 }
 0x3b9   :  { %2395 = vrot.lane.b32.xlu0 %v2394_v58, %s2542_s27 }
 0x3be   :  { %v1336_v1 = vpop.f32.mrf.mxu1 }
 0x3bf   :  { %v1337_v3 = vadd.f32 %v3361_v24, %v1336_v1 }
 0x3c1   :  { %vm1362_vm8 = vcmp.gt.f32.partialorder %v1337_v3, 0.0  ;;  %v1377_v2 = vmul.f32 %v3368_v42, %v1337_v3 }
 0x3c3   :  { %v1391_v16 = vsel %vm1362_vm8, %v1337_v3, %v1377_v2 }
 0x3c4   :  { %1406 = vst.msk [vmem:[#allocation3 + $0x40] sm:$0xff] %vm1397_vm1, %v1391_v16 }
 0x3c8   :  { %v1339_v43 = vpop.f32.mrf.mxu1 }
 0x3c9   :  { %v2321_v31 = vpop.permute.xlu0 %2320  ;;  %v1340_v36 = vadd.f32 %v3361_v24, %v1339_v43 }
 0x3ca   :  { %v2331_v29 = vpop.permute.xlu2 %2330  ;;  %v2322_v40 = vunpack.i.l.bf16 %v2321_v31  ;;  %v2323_v48 = vunpack.i.h.bf16 %v2321_v31 }
 0x3cb   :  { %v2326_v11 = vpop.permute.xlu1 %2325  ;;  %v1441_v7 = vld [vmem:[#allocation3 + $0x3a] sm:$0xff]  ;;  %vm1363_vm13 = vcmp.gt.f32.partialorder %v1340_v36, 0.0  ;;  %v1378_v37 = vmul.f32 %v3368_v42, %v1340_v36  ;;  %v2332_v45 = vunpack.i.l.bf16 %v2331_v29 }
 0x3cc   :  { %v2327_v13 = vunpack.i.l.bf16 %v2326_v11  ;;  %v1430_v25 = vld [vmem:[#allocation3 + $0x39] sm:$0xff]  ;;  %v2409_v9 = vpack.i.bf16 %v1441_v7, %v1440_v60  ;;  %2261 = vmatmul.msk.f32.gmra.mxu3 %vm1397_vm1, %v1441_v7  ;;  %v1765_v46 = vsel %vm1232_vm14, %v1754_v33, %v2322_v40  ;;  %v2328_v52 = vunpack.i.h.bf16 %v2326_v11 }
 0x3cd   :  { %v2404_v44 = vpack.i.bf16 %v1430_v25, %v1429_v61  ;;  %v1392_v49 = vsel %vm1363_vm13, %v1340_v36, %v1378_v37  ;;  %v1766_v57 = vsel %vm1232_vm14, %v1755_v17, %v2323_v48  ;;  %v3635_v30 = vld [vmem:[#allocation3 + $0x40] sm:$0xff]  ;;  %v2333_v60 = vunpack.i.h.bf16 %v2331_v29 }
 0x3ce   :  { %2410 = vrot.lane.b32.xlu0 %v2409_v9, %s2538_s23  ;;  %v1777_v50 = vsel %vm1776_vm11, %v1765_v46, %v2327_v13  ;;  %1407 = vst.msk [vmem:[#allocation3 + $0x48] sm:$0xff] %vm1397_vm1, %v1392_v49  ;;  %v1778_v59 = vsel %vm1776_vm11, %v1766_v57, %v2328_v52  ;;  %v2414_v61 = vpack.i.bf16 %v3635_v30, %v3603_v62 }
 0x3cf   :  { %2405 = vrot.lane.b32.xlu2 %v2404_v44, %s2539_s24  ;;  %2400 = vrot.lane.b32.xlu1 %v2404_v44, %s2543_s28  ;;  %v1789_v51 = vsel %vm1788_vm12, %v1777_v50, %v2332_v45  ;;  %v1790_v63 = vsel %vm1788_vm12, %v1778_v59, %v2333_v60 }
 0x3d0   :  { %1840 = vmatmul.f32.vlgmr.msra.gmra.mxu2 %v1789_v51 }
 0x3d2   :  { %v2346_v36 = vpop.permute.xlu2 %2345 }
 0x3d3   :  { %v2347_v41 = vunpack.i.l.bf16 %v2346_v36 }
 0x3d5   :  { %v1442_v56 = vld [vmem:[#allocation3 + $0x42] sm:$0xff] }
 0x3d6   :  { %v1431_v22 = vld [vmem:[#allocation3 + $0x41] sm:$0xff]  ;;  %v2424_v58 = vpack.i.bf16 %v1442_v56, %v1441_v7  ;;  %2262 = vmatmul.msk.f32.gmra.mxu3 %vm1397_vm1, %v1442_v56 }
 0x3d7   :  { %2415 = vrot.lane.b32.xlu1 %v2414_v61, %s2540_s25  ;;  %v2419_v0 = vpack.i.bf16 %v1431_v22, %v1430_v25  ;;  %v3645_v1 = vld [vmem:[#allocation3 + $0x48] sm:$0xff] }
 0x3d8   :  { %1843 = vmatmul.f32.gmra.mxu2 %v1790_v63  ;;  %2425 = vrot.lane.b32.xlu0 %v2424_v58, %s2536_s29  ;;  %v2429_v3 = vpack.i.bf16 %v3645_v1, %v3635_v30  ;;  %v2348_v58 = vunpack.i.h.bf16 %v2346_v36 }
 0x3d9   :  { %2420 = vrot.lane.b32.xlu2 %v2419_v0, %s2541_s26 }
 0x3df   :  { %2430 = vrot.lane.b32.xlu1 %v2429_v3, %s2542_s27 }
 0x3e1   :  { %v2341_v10 = vpop.permute.xlu1 %2340 }
 0x3e2   :  { %v2336_v18 = vpop.permute.xlu0 %2335  ;;  %v2342_v43 = vunpack.i.l.bf16 %v2341_v10  ;;  %v2343_v50 = vunpack.i.h.bf16 %v2341_v10 }
 0x3e3   :  { %v2337_v21 = vunpack.i.l.bf16 %v2336_v18  ;;  %v2338_v33 = vunpack.i.h.bf16 %v2336_v18  ;;  %v2361_v17 = vpop.permute.xlu2 %2360 }
 0x3e4   :  { %v2362_v60 = vunpack.i.l.bf16 %v2361_v17 }
 0x3e5   :  { %v1721_v31 = vsel %vm1397_vm1, %v3423_v14, %v2337_v21  ;;  %v1722_v57 = vsel %vm1397_vm1, %v3448_v19, %v2338_v33 }
 0x3e6   :  { %v1733_v29 = vsel %vm1730_vm9, %v1721_v31, %v2342_v43  ;;  %v1734_v61 = vsel %vm1730_vm9, %v1722_v57, %v2343_v50 }
 0x3e7   :  { %v1342_v38 = vpop.f32.mrf.mxu1  ;;  %v1744_v37 = vsel %vm337_vm3, %v1733_v29, %v2347_v41  ;;  %v1745_v3 = vsel %vm337_vm3, %v1734_v61, %v2348_v58 }
 0x3e8   :  { %v1343_v26 = vadd.f32 %v3361_v24, %v1342_v38 }
 0x3ea   :  { %vm1364_vm15 = vcmp.gt.f32.partialorder %v1343_v26, 0.0  ;;  %v1379_v6 = vmul.f32 %v3368_v42, %v1343_v26 }
 0x3ec   :  { %v1393_v2 = vsel %vm1364_vm15, %v1343_v26, %v1379_v6  ;;  %vm2042_vm15 = vcmask 15360  }
 0x3ed   :  { %1408 = vst.msk [vmem:[#allocation3 + $0x50] sm:$0xff] %vm1397_vm1, %v1393_v2 }
 0x3f4   :  { %v1443_v4 = vld [vmem:[#allocation3 + $0x4a] sm:$0xff] }
 0x3f5   :  { %v1432_v32 = vld [vmem:[#allocation3 + $0x49] sm:$0xff]  ;;  %v2444_v15 = vpack.i.bf16 %v1443_v4, %v1442_v56  ;;  %2263 = vmatmul.msk.f32.gmra.mxu3 %vm1397_vm1, %v1443_v4 }
 0x3f6   :  { %v2439_v16 = vpack.i.bf16 %v1432_v32, %v1431_v22  ;;  %v3657_v5 = vld [vmem:[#allocation3 + $0x50] sm:$0xff] }
 0x3f7   :  { %2445 = vrot.lane.b32.xlu1 %v2444_v15, %s2538_s23  ;;  %v2449_v20 = vpack.i.bf16 %v3657_v5, %v3645_v1 }
 0x3f8   :  { %2440 = vrot.lane.b32.xlu0 %v2439_v16, %s2539_s24  ;;  %2435 = vrot.lane.b32.xlu2 %v2439_v16, %s2543_s28  ;;  %v2363_v16 = vunpack.i.h.bf16 %v2361_v17 }
 0x3f9   :  { %v2356_v13 = vpop.permute.xlu1 %2355  ;;  %v2376_v36 = vpop.permute.xlu2 %2375 }
 0x3fa   :  { %v2351_v11 = vpop.permute.xlu0 %2350  ;;  %v2357_v14 = vunpack.i.l.bf16 %v2356_v13  ;;  %v2358_v19 = vunpack.i.h.bf16 %v2356_v13  ;;  %v2377_v41 = vunpack.i.l.bf16 %v2376_v36 }
 0x3fb   :  { %v2352_v7 = vunpack.i.l.bf16 %v2351_v11  ;;  %v2353_v56 = vunpack.i.h.bf16 %v2351_v11 }
 0x3fd   :  { %v1756_v51 = vsel %vm1753_vm10, %v1744_v37, %v2352_v7  ;;  %v1757_v26 = vsel %vm1753_vm10, %v1745_v3, %v2353_v56 }
 0x3fe   :  { %v1345_v12 = vpop.f32.mrf.mxu1  ;;  %v1767_v59 = vsel %vm1232_vm14, %v1756_v51, %v2357_v14  ;;  %v1768_v15 = vsel %vm1232_vm14, %v1757_v26, %v2358_v19 }
 0x3ff   :  { %v1346_v8 = vadd.f32 %v3361_v24, %v1345_v12  ;;  %v1779_v0 = vsel %vm1776_vm11, %v1767_v59, %v2362_v60  ;;  %v1780_v18 = vsel %vm1776_vm11, %v1768_v15, %v2363_v16 }
 0x400   :  { %2450 = vrot.lane.b32.xlu2 %v2449_v20, %s2540_s25 }
 0x401   :  { %vm1365_vm4 = vcmp.gt.f32.partialorder %v1346_v8, 0.0  ;;  %v1380_v23 = vmul.f32 %v3368_v42, %v1346_v8 }
 0x403   :  { %v1394_v27 = vsel %vm1365_vm4, %v1346_v8, %v1380_v23 }
 0x404   :  { %1409 = vst.msk [vmem:[#allocation3 + $0x58] sm:$0xff] %vm1397_vm1, %v1394_v27 }
 0x408   :  { %v1348_v40 = vpop.f32.mrf.mxu1 }
 0x409   :  { %v1349_v25 = vadd.f32 %v3361_v24, %v1348_v40 }
 0x40b   :  { %vm1366_vm5 = vcmp.gt.f32.partialorder %v1349_v25, 0.0  ;;  %v1381_v9 = vmul.f32 %v3368_v42, %v1349_v25  ;;  %v1444_v44 = vld [vmem:[#allocation3 + $0x52] sm:$0xff] }
 0x40c   :  { %v1445_v45 = vld [vmem:[#allocation3 + $0x58] sm:$0xff]  ;;  %v2459_v46 = vpack.i.bf16 %v1444_v44, %v1443_v4  ;;  %2264 = vmatmul.msk.f32.gmra.mxu3 %vm1397_vm1, %v1444_v44 }
 0x40d   :  { %v1433_v48 = vld [vmem:[#allocation3 + $0x51] sm:$0xff]  ;;  %v2464_v39 = vpack.i.bf16 %v1445_v45, %v3657_v5  ;;  %v1395_v52 = vsel %vm1366_vm5, %v1349_v25, %v1381_v9 }
 0x40e   :  { %v2454_v49 = vpack.i.bf16 %v1433_v48, %v1432_v32  ;;  %1410 = vst.msk [vmem:[#allocation3 + $0x60] sm:$0xff] %vm1397_vm1, %v1395_v52  ;;  %2460 = vrot.lane.b32.xlu1 %v2459_v46, %s2536_s29 }
 0x40f   :  { %2465 = vrot.lane.b32.xlu2 %v2464_v39, %s2542_s27 }
 0x410   :  { %2455 = vrot.lane.b32.xlu0 %v2454_v49, %s2541_s26 }
 0x411   :  { %v2391_v7 = vpop.permute.xlu2 %2390 }
 0x412   :  { %v2366_v22 = vpop.permute.xlu0 %2365  ;;  %v2371_v31 = vpop.permute.xlu1 %2370  ;;  %v2393_v56 = vunpack.i.h.bf16 %v2391_v7 }
 0x413   :  { %v2367_v63 = vunpack.i.l.bf16 %v2366_v22  ;;  %v2368_v32 = vunpack.i.h.bf16 %v2366_v22  ;;  %v2373_v33 = vunpack.i.h.bf16 %v2371_v31 }
 0x415   :  { %v1791_v38 = vsel %vm1788_vm12, %v1779_v0, %v2367_v63  ;;  %v1447_v6 = vld [vmem:[#allocation3 + $0x5a] sm:$0xff]  ;;  %v1792_v12 = vsel %vm1788_vm12, %v1780_v18, %v2368_v32 }
 0x416   :  { %1846 = vmatmul.f32.gmra.mxu2 %v1791_v38  ;;  %v1446_v2 = vld [vmem:[#allocation3 + $0x59] sm:$0xff]  ;;  %1482 = vrot.lane.b32.xlu1 %v1433_v48, %s2539_s24 }
 0x417   :  { %1526 = vrot.lane.b32.xlu2 %v1444_v44, %s2538_s23  ;;  %v2469_v4 = vpack.i.bf16 %v1446_v2, %v1433_v48  ;;  %2265 = vmatmul.msk.f32.gmra.mxu3 %vm1397_vm1, %v1447_v6  ;;  %v1448_v23 = vld [vmem:[#allocation3 + $0x60] sm:$0xff]  ;;  %v1724_v48 = vsel %vm1397_vm1, %v3502_v54, %v2373_v33 }
 0x419   :  { %2470 = vrot.lane.b32.xlu0 %v2469_v4, %s2543_s28 }
 0x41a   :  { %v2381_v11 = vpop.permute.xlu0 %2380 }
 0x41b   :  { %v2382_v40 = vunpack.i.l.bf16 %v2381_v11  ;;  %v2383_v14 = vunpack.i.h.bf16 %v2381_v11 }
 0x41e   :  { %1849 = vmatmul.f32.gmra.mxu2 %v1792_v12  ;;  %1604 = vrot.lane.b32.xlu1 %v1446_v2, %s2541_s26 }
 0x41f   :  { %1638 = vrot.lane.b32.xlu2 %v1447_v6, %s2536_s29  ;;  %v1351_v20 = vpop.f32.mrf.mxu1 }
 0x420   :  { %v1352_v8 = vadd.f32 %v3361_v24, %v1351_v20  ;;  %v2372_v24 = vunpack.i.l.bf16 %v2371_v31 }
 0x421   :  { %1570 = vrot.lane.b32.xlu0 %v1445_v45, %s2540_s25  ;;  %v2392_v45 = vunpack.i.l.bf16 %v2391_v7 }
 0x422   :  { %vm1367_vm7 = vcmp.gt.f32.partialorder %v1352_v8, 0.0  ;;  %v1382_v10 = vmul.f32 %v3368_v42, %v1352_v8  ;;  %v1723_v42 = vsel %vm1397_vm1, %v3481_v34, %v2372_v24  ;;  %v2378_v34 = vunpack.i.h.bf16 %v2376_v36 }
 0x423   :  { %v1735_v25 = vsel %vm1730_vm9, %v1723_v42, %v2377_v41 }
 0x424   :  { %v1396_v21 = vsel %vm1367_vm7, %v1352_v8, %v1382_v10  ;;  %v1746_v37 = vsel %vm337_vm3, %v1735_v25, %v2382_v40  ;;  %v1736_v52 = vsel %vm1730_vm9, %v1724_v48, %v2378_v34 }
 0x425   :  { %1411 = vst.msk [vmem:[#allocation3 + $0x68] sm:$0xff] %vm1397_vm1, %v1396_v21  ;;  %v1747_v59 = vsel %vm337_vm3, %v1736_v52, %v2383_v14 }
 0x429   :  { %1672 = vrot.lane.b32.xlu0 %v1448_v23, %s2542_s27  ;;  %v2406_v17 = vpop.permute.xlu2 %2405 }
 0x42a   :  { %v2386_v29 = vpop.permute.xlu1 %2385  ;;  %v2407_v22 = vunpack.i.l.bf16 %v2406_v17  ;;  %v2408_v18 = vunpack.i.h.bf16 %v2406_v17 }
 0x42b   :  { %v2387_v13 = vunpack.i.l.bf16 %v2386_v29  ;;  %v2396_v9 = vpop.permute.xlu0 %2395  ;;  %v2388_v39 = vunpack.i.h.bf16 %v2386_v29 }
 0x42c   :  { %v1450_v27 = vld [vmem:[#allocation3 + $0x62] sm:$0xff]  ;;  %v2397_v49 = vunpack.i.l.bf16 %v2396_v9  ;;  %v2398_v19 = vunpack.i.h.bf16 %v2396_v9  ;;  %v1725_v26 = vsel %vm1397_vm1, %v3576_v47, %v2407_v22  ;;  %v1726_v47 = vsel %vm1397_vm1, %v3603_v62, %v2408_v18 }
 0x42d   :  { %v1449_v43 = vld [vmem:[#allocation3 + $0x61] sm:$0xff]  ;;  %2266 = vmatmul.msk.f32.gmra.mxu3 %vm1397_vm1, %v1450_v27  ;;  %v1758_v44 = vsel %vm1753_vm10, %v1746_v37, %v2387_v13  ;;  %v1759_v54 = vsel %vm1753_vm10, %v1747_v59, %v2388_v39 }
 0x42e   :  { %1706 = vrot.lane.b32.xlu1 %v1449_v43, %s2543_s28  ;;  %v1769_v46 = vsel %vm1232_vm14, %v1758_v44, %v2392_v45  ;;  %v1770_v0 = vsel %vm1232_vm14, %v1759_v54, %v2393_v56 }
 0x42f   :  { %v1781_v57 = vsel %vm1776_vm11, %v1769_v46, %v2397_v49  ;;  %v1782_v2 = vsel %vm1776_vm11, %v1770_v0, %v2398_v19 }
 0x433   :  { %v2421_v6 = vpop.permute.xlu2 %2420 }
 0x434   :  { %v2422_v12 = vunpack.i.l.bf16 %v2421_v6  ;;  %v2423_v42 = vunpack.i.h.bf16 %v2421_v6 }
 0x440   :  { %v2411_v60 = vpop.permute.xlu0 %2410 }
 0x441   :  { %v2401_v50 = vpop.permute.xlu1 %2400  ;;  %v2412_v63 = vunpack.i.l.bf16 %v2411_v60  ;;  %v2413_v20 = vunpack.i.h.bf16 %v2411_v60 }
 0x442   :  { %v2402_v51 = vunpack.i.l.bf16 %v2401_v50  ;;  %v2403_v58 = vunpack.i.h.bf16 %v2401_v50 }
 0x443   :  { %v1737_v4 = vsel %vm1730_vm9, %v1725_v26, %v2412_v63  ;;  %v1738_v43 = vsel %vm1730_vm9, %v1726_v47, %v2413_v20 }
 0x444   :  { %v1793_v61 = vsel %vm1788_vm12, %v1781_v57, %v2402_v51  ;;  %v1794_v15 = vsel %vm1788_vm12, %v1782_v2, %v2403_v58 }
 0x445   :  { %1852 = vmatmul.f32.gmra.mxu2 %v1793_v61 }
 0x449   :  { %v2416_v3 = vpop.permute.xlu1 %2415 }
 0x44a   :  { %v2417_v38 = vunpack.i.l.bf16 %v2416_v3  ;;  %v2426_v32 = vpop.permute.xlu0 %2425  ;;  %v2418_v10 = vunpack.i.h.bf16 %v2416_v3 }
 0x44b   :  { %v2427_v8 = vunpack.i.l.bf16 %v2426_v32  ;;  %v2428_v40 = vunpack.i.h.bf16 %v2426_v32 }
 0x44c   :  { %v1748_v16 = vsel %vm337_vm3, %v1737_v4, %v2417_v38  ;;  %v1749_v24 = vsel %vm337_vm3, %v1738_v43, %v2418_v10 }
 0x44d   :  { %1855 = vmatmul.f32.gmra.mxu2 %v1794_v15  ;;  %v1760_v21 = vsel %vm1753_vm10, %v1748_v16, %v2422_v12  ;;  %v1761_v7 = vsel %vm1753_vm10, %v1749_v24, %v2423_v42 }
 0x44e   :  { %v1771_v36 = vsel %vm1232_vm14, %v1760_v21, %v2427_v8  ;;  %v1772_v25 = vsel %vm1232_vm14, %v1761_v7, %v2428_v40  ;;  %v47_v7 = vld [vmem:[%s4007_s1 + $0x120] sm:$0xff] }
 0x451   :  { %v2431_v23 = vpop.permute.xlu1 %2430 }
 0x452   :  { %v2432_v27 = vunpack.i.l.bf16 %v2431_v23  ;;  %v2436_v31 = vpop.permute.xlu2 %2435  ;;  %v2433_v13 = vunpack.i.h.bf16 %v2431_v23 }
 0x453   :  { %v2437_v11 = vunpack.i.l.bf16 %v2436_v31  ;;  %v2438_v62 = vunpack.i.h.bf16 %v2436_v31 }
 0x454   :  { %v1783_v29 = vsel %vm1776_vm11, %v1771_v36, %v2432_v27  ;;  %v1784_v33 = vsel %vm1776_vm11, %v1772_v25, %v2433_v13 }
 0x455   :  { %v1795_v41 = vsel %vm1788_vm12, %v1783_v29, %v2437_v11  ;;  %v1796_v37 = vsel %vm1788_vm12, %v1784_v33, %v2438_v62  ;;  %v50_v11 = vld [vmem:[%s4007_s1 + $0x138] sm:$0xff]  ;;  %v49_v29 = vld [vmem:[%s4007_s1 + $0x130] sm:$0xff] }
 0x456   :  { %1858 = vmatmul.f32.gmra.mxu2 %v1795_v41  ;;  %2004 = vmatpush.msrb.mxu3 %v50_v11 }
 0x458   :  { %2005 = vmatpush.msrb.mxu3 %v49_v29 }
 0x45a   :  { %v2451_v14 = vpop.permute.xlu2 %2450 }
 0x45b   :  { %v2452_v51 = vunpack.i.l.bf16 %v2451_v14  ;;  %v2453_v0 = vunpack.i.h.bf16 %v2451_v14  ;;  %v3791_v14 = vld [vmem:[%s4007_s1 + $0x145] ss:$0 sm:$0xff] }
 0x45e   :  { %1861 = vmatmul.f32.gmra.mxu2 %v1796_v37 }
 0x469   :  { %v2446_v44 = vpop.permute.xlu1 %2445  ;;  %v2466_v61 = vpop.permute.xlu2 %2465 }
 0x46a   :  { %v2441_v9 = vpop.permute.xlu0 %2440  ;;  %v2447_v48 = vunpack.i.l.bf16 %v2446_v44  ;;  %v2448_v59 = vunpack.i.h.bf16 %v2446_v44  ;;  %v2468_v15 = vunpack.i.h.bf16 %v2466_v61 }
 0x46b   :  { %v2442_v45 = vunpack.i.l.bf16 %v2441_v9  ;;  %v2443_v52 = vunpack.i.h.bf16 %v2441_v9  ;;  %v3785_v9 = vld [vmem:[%s4007_s1 + $0x144] ss:$0 sm:$0xff] }
 0x46d   :  { %v1727_v46 = vsel %vm1397_vm1, %v3635_v30, %v2442_v45  ;;  %v1728_v54 = vsel %vm1397_vm1, %v3645_v1, %v2443_v52  ;;  %v2467_v30 = vunpack.i.l.bf16 %v2466_v61 }
 0x46e   :  { %v1739_v39 = vsel %vm1730_vm9, %v1727_v46, %v2447_v48  ;;  %v1740_v22 = vsel %vm1730_vm9, %v1728_v54, %v2448_v59 }
 0x46f   :  { %v1750_v57 = vsel %vm337_vm3, %v1739_v39, %v2452_v51  ;;  %v1751_v26 = vsel %vm337_vm3, %v1740_v22, %v2453_v0 }
 0x471   :  { %v1527_v18 = vpop.permute.xlu2 %1526 }
 0x479   :  { %v1639_v43 = vpop.permute.xlu2 %1638 }
 0x480   :  { %v2461_v49 = vpop.permute.xlu1 %2460 }
 0x481   :  { %v2462_v17 = vunpack.i.l.bf16 %v2461_v49  ;;  %v2463_v38 = vunpack.i.h.bf16 %v2461_v49 }
 0x482   :  { %v2456_v34 = vpop.permute.xlu0 %2455 }
 0x483   :  { %v2457_v50 = vunpack.i.l.bf16 %v2456_v34  ;;  %v2458_v58 = vunpack.i.h.bf16 %v2456_v34 }
 0x485   :  { %v1762_v60 = vsel %vm1753_vm10, %v1750_v57, %v2457_v50  ;;  %v1763_v4 = vsel %vm1753_vm10, %v1751_v26, %v2458_v58 }
 0x486   :  { %v1773_v56 = vsel %vm1232_vm14, %v1762_v60, %v2462_v17  ;;  %v1774_v32 = vsel %vm1232_vm14, %v1763_v4, %v2463_v38 }
 0x487   :  { %v1785_v3 = vsel %vm1776_vm11, %v1773_v56, %v2467_v30  ;;  %v1786_v20 = vsel %vm1776_vm11, %v1774_v32, %v2468_v15 }
 0x488   :  { %v1483_v6 = vpop.permute.xlu1 %1482 }
 0x489   :  { %v1729_v12 = vsel %vm1397_vm1, %v3657_v5, %v1483_v6 }
 0x48a   :  { %v1741_v21 = vsel %vm1730_vm9, %v1729_v12, %v1527_v18 }
 0x48b   :  { %v2471_v63 = vpop.permute.xlu0 %2470 }
 0x48c   :  { %v2472_v19 = vunpack.i.l.bf16 %v2471_v63  ;;  %v2473_v1 = vunpack.i.h.bf16 %v2471_v63  ;;  %v1903_v63 = vpop.f32.mrf.mxu3 }
 0x48e   :  { %v1797_v2 = vsel %vm1788_vm12, %v1785_v3, %v2472_v19  ;;  %v1798_v8 = vsel %vm1788_vm12, %v1786_v20, %v2473_v1 }
 0x48f   :  { %1864 = vmatmul.f32.gmra.mxu2 %v1797_v2 }
 0x490   :  { %v1605_v10 = vpop.permute.xlu1 %1604 }
 0x493   :  { %v1571_v16 = vpop.permute.xlu0 %1570 }
 0x494   :  { %v1752_v23 = vsel %vm337_vm3, %v1741_v21, %v1571_v16  ;;  %v1906_v26 = vpop.f32.mrf.mxu3 }
 0x495   :  { %v1764_v47 = vsel %vm1753_vm10, %v1752_v23, %v1605_v10 }
 0x496   :  { %v1775_v31 = vsel %vm1232_vm14, %v1764_v47, %v1639_v43 }
 0x497   :  { %1867 = vmatmul.f32.gmra.mxu2 %v1798_v8 }
 0x49b   :  { %v1673_v27 = vpop.permute.xlu0 %1672 }
 0x49c   :  { %v1787_v36 = vsel %vm1776_vm11, %v1775_v31, %v1673_v27  ;;  %v1909_v32 = vpop.f32.mrf.mxu3 }
 0x4a0   :  { %v1707_v24 = vpop.permute.xlu1 %1706 }
 0x4a1   :  { %v1799_v5 = vsel %vm1788_vm12, %v1787_v36, %v1707_v24 }
 0x4a2   :  { %1870 = vmatmul.f32.gmra.mxu2 %v1799_v5 }
 0x4a4   :  { %v1912_v20 = vpop.f32.mrf.mxu3 }
 0x4aa   :  { %2256 = vmatmul.msk.f32.vlgmr.msrb.gmra.mxu2 %vm1397_vm1, %v3446_v55  ;;  %v1841_v55 = vpop.f32.mrf.mxu2 }
 0x4ab   :  { %v1842_v44 = vadd.f32 %v3785_v9, %v1841_v55 }
 0x4ac   :  { %v1915_v47 = vpop.f32.mrf.mxu3 }
 0x4b2   :  { %2257 = vmatmul.msk.f32.gmra.mxu2 %vm1397_vm1, %v3471_v35  ;;  %v1844_v42 = vpop.f32.mrf.mxu2 }
 0x4b3   :  { %v1845_v39 = vadd.f32 %v3785_v9, %v1844_v42 }
 0x4b4   :  { %v1918_v24 = vpop.f32.mrf.mxu3 }
 0x4ba   :  { %2258 = vmatmul.msk.f32.gmra.mxu2 %vm1397_vm1, %v3500_v53  ;;  %v1847_v40 = vpop.f32.mrf.mxu2  ;;  %v48_v53 = vld [vmem:[%s4007_s1 + $0x128] sm:$0xff] }
 0x4bb   :  { %2006 = vmatpush.msrb.mxu3 %v48_v53  ;;  %v1848_v17 = vadd.f32 %v3785_v9, %v1847_v40 }
 0x4bc   :  { %v1921_v42 = vpop.f32.mrf.mxu3 }
 0x4bd   :  { %2007 = vmatpush.msrb.mxu3 %v47_v7 }
 0x4c2   :  { %2259 = vmatmul.msk.f32.gmra.mxu2 %vm1397_vm1, %v3555_v28  ;;  %v1850_v35 = vpop.f32.mrf.mxu2 }
 0x4c3   :  { %v1851_v54 = vadd.f32 %v3785_v9, %v1850_v35 }
 0x4ca   :  { %v1853_v41 = vpop.f32.mrf.mxu2 }
 0x4cb   :  { %v1854_v30 = vadd.f32 %v3785_v9, %v1853_v41 }
 0x4cd   :  { %v1904_v0 = vadd.f32 %v1903_v63, %v1854_v30 }
 0x4cf   :  { %v1940_v38 = vmul.f32 %v3791_v14, %v1904_v0  ;;  %vm1928_vm2 = vcmp.gt.f32.partialorder %v1904_v0, 0.0 }
 0x4d1   :  { %v1951_v2 = vsel %vm1928_vm2, %v1904_v0, %v1940_v38 }
 0x4d2   :  { %v1856_v28 = vpop.f32.mrf.mxu2 }
 0x4d3   :  { %v1857_v3 = vadd.f32 %v3785_v9, %v1856_v28  ;;  %v2480_v28 = vld [vmem:[%s4007_s1 + $0x146] ss:$0 sm:$0xff] }
 0x4d5   :  { %v1907_v6 = vadd.f32 %v1906_v26, %v1857_v3 }
 0x4d7   :  { %v1941_v1 = vmul.f32 %v3791_v14, %v1907_v6  ;;  %vm1929_vm6 = vcmp.gt.f32.partialorder %v1907_v6, 0.0 }
 0x4d9   :  { %v1952_v16 = vsel %vm1929_vm6, %v1907_v6, %v1941_v1 }
 0x4da   :  { %v1859_v13 = vpop.f32.mrf.mxu2 }
 0x4db   :  { %v1860_v4 = vadd.f32 %v3785_v9, %v1859_v13 }
 0x4dd   :  { %v1910_v15 = vadd.f32 %v1909_v32, %v1860_v4 }
 0x4df   :  { %v1942_v12 = vmul.f32 %v3791_v14, %v1910_v15  ;;  %vm1930_vm8 = vcmp.gt.f32.partialorder %v1910_v15, 0.0 }
 0x4e1   :  { %v1953_v10 = vsel %vm1930_vm8, %v1910_v15, %v1942_v12 }
 0x4e2   :  { %v1862_v62 = vpop.f32.mrf.mxu2 }
 0x4e3   :  { %v1863_v18 = vadd.f32 %v3785_v9, %v1862_v62 }
 0x4e5   :  { %v1913_v8 = vadd.f32 %v1912_v20, %v1863_v18 }
 0x4e7   :  { %v1943_v23 = vmul.f32 %v3791_v14, %v1913_v8  ;;  %vm1931_vm10 = vcmp.gt.f32.partialorder %v1913_v8, 0.0 }
 0x4e9   :  { %v1954_v43 = vsel %vm1931_vm10, %v1913_v8, %v1943_v23 }
 0x512   :  { %v1865_v25 = vpop.f32.mrf.mxu2 }
 0x513   :  { %v1866_v21 = vadd.f32 %v3785_v9, %v1865_v25 }
 0x515   :  { %v1916_v27 = vadd.f32 %v1915_v47, %v1866_v21 }
 0x517   :  { %v1944_v36 = vmul.f32 %v3791_v14, %v1916_v27  ;;  %vm1932_vm11 = vcmp.gt.f32.partialorder %v1916_v27, 0.0 }
 0x519   :  { %v1955_v11 = vsel %vm1932_vm11, %v1916_v27, %v1944_v36 }
 0x51a   :  { %v3778_v33 = vpop.f32.mrf.mxu2 }
 0x51b   :  { %v1869_v31 = vadd.f32 %v3785_v9, %v3778_v33 }
 0x51d   :  { %v1919_v5 = vadd.f32 %v1918_v24, %v1869_v31 }
 0x51f   :  { %v1945_v55 = vmul.f32 %v3791_v14, %v1919_v5  ;;  %vm1933_vm12 = vcmp.gt.f32.partialorder %v1919_v5, 0.0 }
 0x521   :  { %v1956_v35 = vsel %vm1933_vm12, %v1919_v5, %v1945_v55 }
 0x525   :  { %v3780_v37 = vpop.f32.mrf.mxu2 }
 0x526   :  { %v1872_v29 = vadd.f32 %v3785_v9, %v3780_v37 }
 0x528   :  { %v1922_v40 = vadd.f32 %v1921_v42, %v1872_v29 }
 0x52a   :  { %v1946_v41 = vmul.f32 %v3791_v14, %v1922_v40  ;;  %vm1934_vm13 = vcmp.gt.f32.partialorder %v1922_v40, 0.0 }
 0x52c   :  { %v1957_v53 = vsel %vm1934_vm13, %v1922_v40, %v1946_v41 }
 0x52d   :  { %v1891_v45 = vpop.f32.mrf.mxu2 }
 0x52e   :  { %v1892_v48 = vadd.f32 %v1891_v45, %v1842_v44 }
 0x530   :  { %vm1924_vm3 = vcmp.gt.f32.partialorder %v1892_v48, 0.0  ;;  %v1936_v46 = vmul.f32 %v3791_v14, %v1892_v48 }
 0x532   :  { %v1947_v34 = vsel %vm1924_vm3, %v1892_v48, %v1936_v46 }
 0x533   :  { %2267 = vmatmul.msk.f32.vlgmr.msrb.gmra.mxu3 %vm1730_vm9, %v1947_v34 }
 0x535   :  { %v1894_v49 = vpop.f32.mrf.mxu2 }
 0x536   :  { %v1895_v50 = vadd.f32 %v1894_v49, %v1845_v39 }
 0x538   :  { %v1937_v51 = vmul.f32 %v3791_v14, %v1895_v50  ;;  %vm1925_vm14 = vcmp.gt.f32.partialorder %v1895_v50, 0.0 }
 0x53a   :  { %v1948_v52 = vsel %vm1925_vm14, %v1895_v50, %v1937_v51 }
 0x53b   :  { %2268 = vmatmul.msk.f32.gmra.mxu3 %vm1730_vm9, %v1948_v52 }
 0x53d   :  { %v1897_v57 = vpop.f32.mrf.mxu2 }
 0x53e   :  { %v1898_v59 = vadd.f32 %v1897_v57, %v1848_v17 }
 0x540   :  { %v1938_v60 = vmul.f32 %v3791_v14, %v1898_v59  ;;  %vm1926_vm1 = vcmp.gt.f32.partialorder %v1898_v59, 0.0 }
 0x542   :  { %v1949_v61 = vsel %vm1926_vm1, %v1898_v59, %v1938_v60 }
 0x543   :  { %2269 = vmatmul.msk.f32.gmra.mxu3 %vm1730_vm9, %v1949_v61 }
 0x545   :  { %v1900_v56 = vpop.f32.mrf.mxu2 }
 0x546   :  { %v1901_v22 = vadd.f32 %v1900_v56, %v1851_v54 }
 0x548   :  { %v1939_v58 = vmul.f32 %v3791_v14, %v1901_v22  ;;  %vm1927_vm0 = vcmp.gt.f32.partialorder %v1901_v22, 0.0 }
 0x54a   :  { %v1950_v19 = vsel %vm1927_vm0, %v1901_v22, %v1939_v58 }
 0x54b   :  { %2270 = vmatmul.msk.f32.gmra.mxu3 %vm1730_vm9, %v1950_v19 }
 0x553   :  { %2271 = vmatmul.msk.f32.gmra.mxu3 %vm1730_vm9, %v1951_v2 }
 0x55b   :  { %2272 = vmatmul.msk.f32.gmra.mxu3 %vm1730_vm9, %v1952_v16 }
 0x563   :  { %2273 = vmatmul.msk.f32.gmra.mxu3 %vm1730_vm9, %v1953_v10 }
 0x56b   :  { %2274 = vmatmul.msk.f32.gmra.mxu3 %vm1730_vm9, %v1954_v43 }
 0x573   :  { %2275 = vmatmul.msk.f32.gmra.mxu3 %vm1730_vm9, %v1955_v11 }
 0x57b   :  { %2276 = vmatmul.msk.f32.gmra.mxu3 %vm1730_vm9, %v1956_v35 }
 0x583   :  { %2277 = vmatmul.msk.f32.gmra.mxu3 %vm1730_vm9, %v1957_v53  ;;  %vm2208_vm9 = vcmask 64512  }
 0x5b6   :  { %v2009_v13 = vpop.f32.mrf.mxu3 }
 0x5b7   :  { %v3830_v7 = vadd.f32 %v2480_v28, %v2009_v13 }
 0x5b9   :  { %v2043_v62 = vsel %vm2042_vm15, %v3830_v7, -inf }
 0x5ba   :  { %2044 = vmax.xlane.f32.xlu2 %v2043_v62 }
 0x5be   :  { %v2012_v25 = vpop.f32.mrf.mxu3 }
 0x5bf   :  { %v3834_v33 = vadd.f32 %v2480_v28, %v2012_v25 }
 0x5c1   :  { %v2046_v37 = vsel %vm2042_vm15, %v3834_v33, -inf }
 0x5c2   :  { %2047 = vmax.xlane.f32.xlu0 %v2046_v37 }
 0x5c6   :  { %v2015_v9 = vpop.f32.mrf.mxu3 }
 0x5c7   :  { %v3838_v44 = vadd.f32 %v2480_v28, %v2015_v9 }
 0x5c9   :  { %v2049_v45 = vsel %vm2042_vm15, %v3838_v44, -inf }
 0x5ca   :  { %2050 = vmax.xlane.f32.xlu1 %v2049_v45 }
 0x5ce   :  { %v2018_v48 = vpop.f32.mrf.mxu3 }
 0x5cf   :  { %v3842_v14 = vadd.f32 %v2480_v28, %v2018_v48 }
 0x5d1   :  { %v2052_v46 = vsel %vm2042_vm15, %v3842_v14, -inf }
 0x5d2   :  { %2053 = vmax.xlane.f32.xlu2 %v2052_v46 }
 0x5d6   :  { %v2021_v34 = vpop.f32.mrf.mxu3 }
 0x5d7   :  { %v3846_v39 = vadd.f32 %v2480_v28, %v2021_v34 }
 0x5d9   :  { %v2055_v49 = vsel %vm2042_vm15, %v3846_v39, -inf }
 0x5da   :  { %2056 = vmax.xlane.f32.xlu2 %v2055_v49 }
 0x5de   :  { %v2024_v50 = vpop.f32.mrf.mxu3 }
 0x5df   :  { %v3850_v51 = vadd.f32 %v2480_v28, %v2024_v50 }
 0x5e1   :  { %v2058_v52 = vsel %vm2042_vm15, %v3850_v51, -inf }
 0x5e2   :  { %2059 = vmax.xlane.f32.xlu0 %v2058_v52 }
 0x5e6   :  { %v2027_v17 = vpop.f32.mrf.mxu3 }
 0x5e7   :  { %v3854_v57 = vadd.f32 %v2480_v28, %v2027_v17 }
 0x5e9   :  { %v2061_v59 = vsel %vm2042_vm15, %v3854_v57, -inf }
 0x5ea   :  { %2062 = vmax.xlane.f32.xlu1 %v2061_v59 }
 0x5ee   :  { %v2030_v60 = vpop.f32.mrf.mxu3 }
 0x5ef   :  { %v3858_v61 = vadd.f32 %v2480_v28, %v2030_v60 }
 0x5f1   :  { %v2064_v54 = vsel %vm2042_vm15, %v3858_v61, -inf }
 0x5f2   :  { %2065 = vmax.xlane.f32.xlu2 %v2064_v54 }
 0x5f6   :  { %v2033_v56 = vpop.f32.mrf.mxu3 }
 0x5f7   :  { %v3862_v30 = vadd.f32 %v2480_v28, %v2033_v56 }
 0x5f9   :  { %v2067_v22 = vsel %vm2042_vm15, %v3862_v30, -inf }
 0x5fa   :  { %2068 = vmax.xlane.f32.xlu0 %v2067_v22 }
 0x5fe   :  { %v2036_v58 = vpop.f32.mrf.mxu3 }
 0x5ff   :  { %v3866_v63 = vadd.f32 %v2480_v28, %v2036_v58 }
 0x601   :  { %v2070_v0 = vsel %vm2042_vm15, %v3866_v63, -inf }
 0x602   :  { %2071 = vmax.xlane.f32.xlu1 %v2070_v0 }
 0x606   :  { %v2039_v19 = vpop.f32.mrf.mxu3 }
 0x607   :  { %v3870_v3 = vadd.f32 %v2480_v28, %v2039_v19 }
 0x609   :  { %v2073_v38 = vsel %vm2042_vm15, %v3870_v3, -inf }
 0x60a   :  { %2074 = vmax.xlane.f32.xlu2 %v2073_v38 }
 0x62d   :  { %v2045_v26 = vpop.xlane.xlu2 %2044 }
 0x62e   :  { %v2076_v6 = vsub.f32 %v3830_v7, %v2045_v26 }
 0x630   :  { %v2087_v2 = vmul.f32 1.442695, %v2076_v6 }
 0x632   :  { %2481 = vpow2.f32 %v2087_v2 }
 0x635   :  { %v2048_v4 = vpop.xlane.xlu0 %2047 }
 0x636   :  { %v2077_v1 = vsub.f32 %v3834_v33, %v2048_v4 }
 0x638   :  { %v3876_v32 = vpop.eup %2481  ;;  %v2089_v15 = vmul.f32 1.442695, %v2077_v1 }
 0x639   :  { %v2109_v16 = vsel %vm2042_vm15, %v3876_v32, 0.0 }
 0x63a   :  { %2483 = vpow2.f32 %v2089_v15  ;;  %2110 = vadd.xlane.f32.xlu0 %v2109_v16 }
 0x63d   :  { %v2051_v18 = vpop.xlane.xlu1 %2050 }
 0x63e   :  { %v2078_v12 = vsub.f32 %v3838_v44, %v2051_v18 }
 0x640   :  { %v3881_v20 = vpop.eup %2483  ;;  %v2091_v8 = vmul.f32 1.442695, %v2078_v12 }
 0x641   :  { %v2112_v10 = vsel %vm2042_vm15, %v3881_v20, 0.0 }
 0x642   :  { %2485 = vpow2.f32 %v2091_v8  ;;  %2113 = vadd.xlane.f32.xlu1 %v2112_v10 }
 0x645   :  { %v2054_v21 = vpop.xlane.xlu2 %2053 }
 0x646   :  { %v2079_v23 = vsub.f32 %v3842_v14, %v2054_v21 }
 0x648   :  { %v3886_v47 = vpop.eup %2485  ;;  %v2093_v27 = vmul.f32 1.442695, %v2079_v23 }
 0x649   :  { %v2115_v43 = vsel %vm2042_vm15, %v3886_v47, 0.0 }
 0x64a   :  { %2487 = vpow2.f32 %v2093_v27  ;;  %2116 = vadd.xlane.f32.xlu2 %v2115_v43 }
 0x64d   :  { %v2057_v31 = vpop.xlane.xlu2 %2056 }
 0x64e   :  { %v2080_v36 = vsub.f32 %v3846_v39, %v2057_v31 }
 0x650   :  { %v3891_v24 = vpop.eup %2487  ;;  %v2095_v5 = vmul.f32 1.442695, %v2080_v36 }
 0x651   :  { %v2118_v11 = vsel %vm2042_vm15, %v3891_v24, 0.0 }
 0x652   :  { %2489 = vpow2.f32 %v2095_v5  ;;  %2119 = vadd.xlane.f32.xlu0 %v2118_v11 }
 0x655   :  { %v2060_v29 = vpop.xlane.xlu0 %2059 }
 0x656   :  { %v2081_v55 = vsub.f32 %v3850_v51, %v2060_v29 }
 0x658   :  { %v3896_v42 = vpop.eup %2489  ;;  %v2097_v40 = vmul.f32 1.442695, %v2081_v55 }
 0x659   :  { %v2121_v35 = vsel %vm2042_vm15, %v3896_v42, 0.0 }
 0x65a   :  { %2491 = vpow2.f32 %v2097_v40  ;;  %2122 = vadd.xlane.f32.xlu1 %v2121_v35 }
 0x65d   :  { %v2063_v41 = vpop.xlane.xlu1 %2062 }
 0x65e   :  { %v2082_v53 = vsub.f32 %v3854_v57, %v2063_v41 }
 0x660   :  { %v3901_v28 = vpop.eup %2491  ;;  %v2099_v13 = vmul.f32 1.442695, %v2082_v53 }
 0x661   :  { %v2124_v62 = vsel %vm2042_vm15, %v3901_v28, 0.0 }
 0x662   :  { %2493 = vpow2.f32 %v2099_v13  ;;  %2125 = vadd.xlane.f32.xlu2 %v2124_v62 }
 0x665   :  { %v2066_v25 = vpop.xlane.xlu2 %2065 }
 0x666   :  { %v2083_v37 = vsub.f32 %v3858_v61, %v2066_v25 }
 0x668   :  { %v3906_v9 = vpop.eup %2493  ;;  %v2101_v45 = vmul.f32 1.442695, %v2083_v37 }
 0x669   :  { %v2127_v48 = vsel %vm2042_vm15, %v3906_v9, 0.0 }
 0x66a   :  { %2495 = vpow2.f32 %v2101_v45  ;;  %2128 = vadd.xlane.f32.xlu0 %v2127_v48 }
 0x66d   :  { %v2069_v46 = vpop.xlane.xlu0 %2068 }
 0x66e   :  { %v2084_v34 = vsub.f32 %v3862_v30, %v2069_v46 }
 0x670   :  { %v3911_v49 = vpop.eup %2495  ;;  %v2103_v50 = vmul.f32 1.442695, %v2084_v34 }
 0x671   :  { %v2130_v52 = vsel %vm2042_vm15, %v3911_v49, 0.0 }
 0x672   :  { %2497 = vpow2.f32 %v2103_v50  ;;  %2131 = vadd.xlane.f32.xlu1 %v2130_v52 }
 0x675   :  { %v2072_v17 = vpop.xlane.xlu1 %2071 }
 0x676   :  { %v2085_v59 = vsub.f32 %v3866_v63, %v2072_v17 }
 0x678   :  { %v3916_v60 = vpop.eup %2497  ;;  %v2105_v54 = vmul.f32 1.442695, %v2085_v59 }
 0x679   :  { %v2133_v56 = vsel %vm2042_vm15, %v3916_v60, 0.0 }
 0x67a   :  { %2499 = vpow2.f32 %v2105_v54  ;;  %2134 = vadd.xlane.f32.xlu2 %v2133_v56 }
 0x67d   :  { %v2075_v22 = vpop.xlane.xlu2 %2074 }
 0x67e   :  { %v2086_v58 = vsub.f32 %v3870_v3, %v2075_v22 }
 0x680   :  { %v3921_v0 = vpop.eup %2499  ;;  %v2107_v19 = vmul.f32 1.442695, %v2086_v58 }
 0x681   :  { %v2136_v38 = vsel %vm2042_vm15, %v3921_v0, 0.0 }
 0x682   :  { %2501 = vpow2.f32 %v2107_v19  ;;  %2137 = vadd.xlane.f32.xlu0 %v2136_v38 }
 0x688   :  { %v3925_v26 = vpop.eup %2501 }
 0x689   :  { %v2139_v6 = vsel %vm2042_vm15, %v3925_v26, 0.0 }
 0x68a   :  { %2140 = vadd.xlane.f32.xlu1 %v2139_v6 }
 0x6ad   :  { %v2111_v2 = vpop.xlane.xlu0 %2110 }
 0x6ae   :  { %2503 = vrcp.f32 %v2111_v2 }
 0x6b4   :  { %v2504_v4 = vpop.eup %2503 }
 0x6b5   :  { %v2153_v1 = vmul.f32 %v2504_v4, %v2111_v2  ;;  %v2114_v15 = vpop.xlane.xlu1 %2113 }
 0x6b6   :  { %2505 = vrcp.f32 %v2114_v15 }
 0x6b7   :  { %v2164_v16 = vsub.f32 2.0, %v2153_v1 }
 0x6b9   :  { %v2175_v18 = vmul.f32 %v2504_v4, %v2164_v16 }
 0x6bb   :  { %v2186_v12 = vmul.f32 %v3876_v32, %v2175_v18 }
 0x6bc   :  { %v2506_v8 = vpop.eup %2505 }
 0x6bd   :  { %v2197_v10 = vsel %vm2042_vm15, %v2186_v12, %v3830_v7  ;;  %v2154_v21 = vmul.f32 %v2506_v8, %v2114_v15  ;;  %v2117_v23 = vpop.xlane.xlu2 %2116 }
 0x6be   :  { %2209 = vst.msk [vmem:[%s4008_s2] sm:$0xff] %vm2208_vm9, %v2197_v10  ;;  %2507 = vrcp.f32 %v2117_v23 }
 0x6bf   :  { %v2165_v27 = vsub.f32 2.0, %v2154_v21 }
 0x6c1   :  { %v2176_v43 = vmul.f32 %v2506_v8, %v2165_v27 }
 0x6c3   :  { %v2187_v31 = vmul.f32 %v3881_v20, %v2176_v43 }
 0x6c4   :  { %v2508_v36 = vpop.eup %2507 }
 0x6c5   :  { %v2198_v32 = vsel %vm2042_vm15, %v2187_v31, %v3834_v33  ;;  %v2155_v5 = vmul.f32 %v2508_v36, %v2117_v23  ;;  %v2120_v11 = vpop.xlane.xlu0 %2119 }
 0x6c6   :  { %2210 = vst.msk [vmem:[%s4008_s2 + $0x8] sm:$0xff] %vm2208_vm9, %v2198_v32  ;;  %2509 = vrcp.f32 %v2120_v11 }
 0x6c7   :  { %v2166_v7 = vsub.f32 2.0, %v2155_v5 }
 0x6c9   :  { %v2177_v29 = vmul.f32 %v2508_v36, %v2166_v7 }
 0x6cb   :  { %v2188_v55 = vmul.f32 %v3886_v47, %v2177_v29 }
 0x6cc   :  { %v2510_v40 = vpop.eup %2509 }
 0x6cd   :  { %v2199_v20 = vsel %vm2042_vm15, %v2188_v55, %v3838_v44  ;;  %v2156_v35 = vmul.f32 %v2510_v40, %v2120_v11  ;;  %v2123_v41 = vpop.xlane.xlu1 %2122 }
 0x6ce   :  { %2211 = vst.msk [vmem:[%s4008_s2 + $0x10] sm:$0xff] %vm2208_vm9, %v2199_v20  ;;  %2511 = vrcp.f32 %v2123_v41 }
 0x6cf   :  { %v2167_v33 = vsub.f32 2.0, %v2156_v35 }
 0x6d1   :  { %v2178_v53 = vmul.f32 %v2510_v40, %v2167_v33 }
 0x6d3   :  { %v2189_v13 = vmul.f32 %v3891_v24, %v2178_v53 }
 0x6d4   :  { %v2512_v62 = vpop.eup %2511 }
 0x6d5   :  { %v2200_v47 = vsel %vm2042_vm15, %v2189_v13, %v3842_v14  ;;  %v2157_v25 = vmul.f32 %v2512_v62, %v2123_v41  ;;  %v2126_v37 = vpop.xlane.xlu2 %2125 }
 0x6d6   :  { %2212 = vst.msk [vmem:[%s4008_s2 + $0x18] sm:$0xff] %vm2208_vm9, %v2200_v47  ;;  %2513 = vrcp.f32 %v2126_v37 }
 0x6d7   :  { %v2168_v44 = vsub.f32 2.0, %v2157_v25 }
 0x6d9   :  { %v2179_v45 = vmul.f32 %v2512_v62, %v2168_v44 }
 0x6db   :  { %v2190_v48 = vmul.f32 %v3896_v42, %v2179_v45 }
 0x6dc   :  { %v2514_v46 = vpop.eup %2513 }
 0x6dd   :  { %v2201_v24 = vsel %vm2042_vm15, %v2190_v48, %v3846_v39  ;;  %v2158_v34 = vmul.f32 %v2514_v46, %v2126_v37  ;;  %v2129_v50 = vpop.xlane.xlu0 %2128 }
 0x6de   :  { %2213 = vst.msk [vmem:[%s4008_s2 + $0x20] sm:$0xff] %vm2208_vm9, %v2201_v24  ;;  %2515 = vrcp.f32 %v2129_v50 }
 0x6df   :  { %v2169_v14 = vsub.f32 2.0, %v2158_v34 }
 0x6e1   :  { %v2180_v52 = vmul.f32 %v2514_v46, %v2169_v14 }
 0x6e3   :  { %v2191_v17 = vmul.f32 %v3901_v28, %v2180_v52 }
 0x6e4   :  { %v2516_v59 = vpop.eup %2515 }
 0x6e5   :  { %v2202_v42 = vsel %vm2042_vm15, %v2191_v17, %v3850_v51  ;;  %v2159_v54 = vmul.f32 %v2516_v59, %v2129_v50  ;;  %v2132_v56 = vpop.xlane.xlu1 %2131 }
 0x6e6   :  { %2214 = vst.msk [vmem:[%s4008_s2 + $0x28] sm:$0xff] %vm2208_vm9, %v2202_v42  ;;  %2517 = vrcp.f32 %v2132_v56 }
 0x6e7   :  { %v2170_v39 = vsub.f32 2.0, %v2159_v54 }
 0x6e9   :  { %v2181_v22 = vmul.f32 %v2516_v59, %v2170_v39 }
 0x6eb   :  { %v2192_v58 = vmul.f32 %v3906_v9, %v2181_v22 }
 0x6ec   :  { %v2518_v19 = vpop.eup %2517 }
 0x6ed   :  { %v2203_v28 = vsel %vm2042_vm15, %v2192_v58, %v3854_v57  ;;  %v2160_v38 = vmul.f32 %v2518_v19, %v2132_v56  ;;  %v2135_v6 = vpop.xlane.xlu2 %2134 }
 0x6ee   :  { %2215 = vst.msk [vmem:[%s4008_s2 + $0x30] sm:$0xff] %vm2208_vm9, %v2203_v28  ;;  %2519 = vrcp.f32 %v2135_v6 }
 0x6ef   :  { %v2171_v51 = vsub.f32 2.0, %v2160_v38 }
 0x6f1   :  { %v2182_v2 = vmul.f32 %v2518_v19, %v2171_v51 }
 0x6f3   :  { %v2193_v4 = vmul.f32 %v3911_v49, %v2182_v2 }
 0x6f4   :  { %v2520_v1 = vpop.eup %2519 }
 0x6f5   :  { %v2204_v9 = vsel %vm2042_vm15, %v2193_v4, %v3858_v61  ;;  %v2161_v15 = vmul.f32 %v2520_v1, %v2135_v6  ;;  %v2138_v16 = vpop.xlane.xlu0 %2137 }
 0x6f6   :  { %2216 = vst.msk [vmem:[%s4008_s2 + $0x38] sm:$0xff] %vm2208_vm9, %v2204_v9  ;;  %2521 = vrcp.f32 %v2138_v16 }
 0x6f7   :  { %v2172_v57 = vsub.f32 2.0, %v2161_v15 }
 0x6f9   :  { %v2183_v18 = vmul.f32 %v2520_v1, %v2172_v57 }
 0x6fb   :  { %v2194_v12 = vmul.f32 %v3916_v60, %v2183_v18 }
 0x6fc   :  { %v2522_v8 = vpop.eup %2521 }
 0x6fd   :  { %v2205_v49 = vsel %vm2042_vm15, %v2194_v12, %v3862_v30  ;;  %v2162_v10 = vmul.f32 %v2522_v8, %v2138_v16  ;;  %v2141_v21 = vpop.xlane.xlu1 %2140 }
 0x6fe   :  { %2217 = vst.msk [vmem:[%s4008_s2 + $0x40] sm:$0xff] %vm2208_vm9, %v2205_v49  ;;  %2523 = vrcp.f32 %v2141_v21 }
 0x6ff   :  { %v2173_v61 = vsub.f32 2.0, %v2162_v10 }
 0x701   :  { %v2184_v23 = vmul.f32 %v2522_v8, %v2173_v61 }
 0x703   :  { %v2195_v27 = vmul.f32 %v3921_v0, %v2184_v23 }
 0x704   :  { %v2524_v43 = vpop.eup %2523 }
 0x705   :  { %v2206_v60 = vsel %vm2042_vm15, %v2195_v27, %v3866_v63  ;;  %v2163_v31 = vmul.f32 %v2524_v43, %v2141_v21 }
 0x706   :  { %2218 = vst.msk [vmem:[%s4008_s2 + $0x48] sm:$0xff] %vm2208_vm9, %v2206_v60 }
 0x707   :  { %v2174_v30 = vsub.f32 2.0, %v2163_v31 }
 0x709   :  { %v2185_v36 = vmul.f32 %v2524_v43, %v2174_v30 }
 0x70b   :  { %v2196_v32 = vmul.f32 %v3925_v26, %v2185_v36 }
 0x70d   :  { %v2207_v5 = vsel %vm2042_vm15, %v2196_v32, %v3870_v3 }
 0x70e   :  { %2219 = vst.msk [vmem:[%s4008_s2 + $0x50] sm:$0xff] %vm2208_vm9, %v2207_v5 }

</bundles_post_ra>
